<compile_context>
chip_gen: v5e
topology: v5e:2x2
jax: 0.10.0
libtpu: 0.0.40
codegen_flags: <defaults>
</compile_context>

<pallas_src>
import jax
import jax.numpy as jnp
from jax.experimental import pallas as pl
from jax.experimental.pallas import tpu as pltpu


COUT1, COUT2 = 16, 32          # real output channels of the two convs
LANE = 128                     # lane width / channel padding target
TM1 = 256                      # conv1 M tile (>=2 parallel blocks at B=2)
VMEM_LIMIT = 16 * 1024 * 1024  # conservative; fine on v5e/v6e/v7x


# ----------------------------------------------------------------------------
# Pallas kernels
# ----------------------------------------------------------------------------
def _conv_relu_kernel(a_ref, w_ref, b_ref, o_ref):
    """o = relu(a @ w + bias), single K step (full K resident in VMEM).

    a:(TM,Kp) bf16, w:(Kp,128) bf16 (constant block), b:(1,128) f32,
    o:(TM,128) bf16.  No accumulator scratch, no phase predication."""
    acc = jnp.dot(a_ref[...], w_ref[...], preferred_element_type=jnp.float32)
    o_ref[...] = jnp.maximum(acc + b_ref[...], 0.0).astype(o_ref.dtype)


def _make_conv_spp_kernel(levels, oh, ow):
    """Fused conv2 (im2col matmul + bias + ReLU) + spatial pyramid max pool.

    Per grid step (one batch element):
      a:(1, oh*ow, K2) bf16, w:(K2,128) bf16, b:(1,128) f32
      -> o:(1, sum(L*L), 128) f32, written with a single lane-dense store.
    Coarser pyramid levels are derived hierarchically from the finest level's
    bins (valid because levels are nested divisors; asserted in the wrapper)."""
    levels = tuple(levels)
    sorted_desc = sorted(set(levels), reverse=True)

    def kernel(a_ref, w_ref, b_ref, o_ref):
        h = jnp.dot(a_ref[0], w_ref[...], preferred_element_type=jnp.float32)
        h = jnp.maximum(h + b_ref[...], 0.0)               # (oh*ow, C) f32
        fm = h.reshape(oh, ow, h.shape[-1])                # (oh, ow, C)

        lmax = sorted_desc[0]
        bh, bw = oh // lmax, ow // lmax

        # finest level: one small spatial reduction per bin -> (1, C) rows
        fine = [[jnp.max(jnp.max(fm[i * bh:(i + 1) * bh,
                                    j * bw:(j + 1) * bw, :], axis=0),
                         axis=0, keepdims=True)
                 for j in range(lmax)] for i in range(lmax)]

        maps = {lmax: fine}
        prev_l, prev = lmax, fine
        for L in sorted_desc[1:]:
            step = prev_l // L
            cur = [[None] * L for _ in range(L)]
            for i in range(L):
                for j in range(L):
                    acc = None
                    for di in range(step):
                        for dj in range(step):
                            v = prev[i * step + di][j * step + dj]
                            acc = v if acc is None else jnp.maximum(acc, v)
                    cur[i][j] = acc
            maps[L] = cur
            prev_l, prev = L, cur

        rows = []
        for L in levels:
            m = maps[L]
            for i in range(L):
                for j in range(L):
                    rows.append(m[i][j])
        # one full-tile, lane-dense store of all bins for this batch element
        o_ref[0] = jnp.concatenate(rows, axis=0).astype(o_ref.dtype)

    return kernel


# ----------------------------------------------------------------------------
# Glue: NHWC im2col + wrappers around pallas_call
# ----------------------------------------------------------------------------
def _im2col_nhwc(x, kh, kw, stride, pad):
    """x: (B, H, W, C) -> (B*OH*OW, kh*kw*C); patch index = (i*kw + j)*C + c."""
    B, H, W, C = x.shape
    xp = jnp.pad(x, ((0, 0), (pad, pad), (pad, pad), (0, 0)))
    OH = (H + 2 * pad - kh) // stride + 1
    OW = (W + 2 * pad - kw) // stride + 1
    cols = []
    for i in range(kh):
        for j in range(kw):
            cols.append(xp[:, i:i + stride * OH:stride, j:j + stride * OW:stride, :])
    p = jnp.stack(cols, axis=3)                      # (B, OH, OW, kh*kw, C)
    p = p.reshape(B * OH * OW, kh * kw * C)
    return p, OH, OW


def conv1_bias_relu(x_nhwc, wm_pad, bias_pad, *, kh=5, kw=5, stride=2, pad=2):
    """First conv: NHWC conv + bias + ReLU via a single-K-step Pallas matmul.

    Returns NHWC output with the padded (128) channel axis; padded channels
    are exactly zero (zero weights/bias + ReLU), so the map can feed conv2
    directly without a lane slice."""
    B, H, W, Cin = x_nhwc.shape
    K_pad, N_pad = wm_pad.shape
    a, OH, OW = _im2col_nhwc(x_nhwc, kh, kw, stride, pad)     # (M, K) bf16
    M, K = a.shape
    assert K <= K_pad and K_pad % LANE == 0 and N_pad % LANE == 0

    M_pad = pl.cdiv(M, TM1) * TM1
    a = jnp.pad(a, ((0, M_pad - M), (0, K_pad - K))).astype(jnp.bfloat16)

    grid = (M_pad // TM1,)
    bytes_accessed = (M_pad * K_pad * 2 + K_pad * N_pad * 2
                      + N_pad * 4 + M_pad * N_pad * 2)

    out = pl.pallas_call(
        _conv_relu_kernel,
        out_shape=jax.ShapeDtypeStruct((M_pad, N_pad), jnp.bfloat16),
        grid=grid,
        in_specs=[
            pl.BlockSpec((TM1, K_pad), lambda i: (i, 0)),
            pl.BlockSpec((K_pad, N_pad), lambda i: (0, 0)),   # resident weights
            pl.BlockSpec((1, N_pad), lambda i: (0, 0)),       # resident bias
        ],
        out_specs=pl.BlockSpec((TM1, N_pad), lambda i: (i, 0)),
        compiler_params=pltpu.CompilerParams(
            dimension_semantics=("parallel",),
            vmem_limit_bytes=VMEM_LIMIT,
        ),
        cost_estimate=pl.CostEstimate(
            flops=2 * M_pad * K_pad * N_pad,
            transcendentals=0,
            bytes_accessed=bytes_accessed),
    )(a, wm_pad, bias_pad)

    out = out[:M]                                            # drop M padding
    return out.reshape(B, OH, OW, N_pad)                     # NHWC, padded C


def conv2_spp_fused(f_nhwc, wm_pad, bias_pad, *, c_real, levels=(1, 2, 4),
                    kh=3, kw=3, stride=2, pad=1):
    """Fused conv2 + spatial pyramid max pool (one pallas_call, grid over B).

    Consumes the padded 128-lane NHWC map directly (conv2 weights carry zeros
    for the padded input channels).  Returns (B, c_real * sum(L*L)) with the
    PyTorch ordering (per level: flatten of the (B, C, L, L) pooled map)."""
    B, H, W, C = f_nhwc.shape
    K_pad, N_pad = wm_pad.shape
    a, OH, OW = _im2col_nhwc(f_nhwc, kh, kw, stride, pad)     # (B*OH*OW, K2)
    K2 = a.shape[1]
    assert K2 == K_pad and N_pad % LANE == 0
    a = a.reshape(B, OH * OW, K2).astype(jnp.bfloat16)

    levels = tuple(levels)
    nbins = sum(L * L for L in levels)
    sorted_desc = sorted(set(levels), reverse=True)
    assert OH % sorted_desc[0] == 0 and OW % sorted_desc[0] == 0
    for fa, fb in zip(sorted_desc, sorted_desc[1:]):
        assert fa % fb == 0, "pyramid levels must be nested divisors"

    bytes_accessed = (B * OH * OW * K2 * 2 + K_pad * N_pad * 2
                      + N_pad * 4 + B * nbins * N_pad * 4)

    out = pl.pallas_call(
        _make_conv_spp_kernel(levels, OH, OW),
        out_shape=jax.ShapeDtypeStruct((B, nbins, N_pad), jnp.float32),
        grid=(B,),
        in_specs=[
            pl.BlockSpec((1, OH * OW, K2), lambda b: (b, 0, 0)),
            pl.BlockSpec((K_pad, N_pad), lambda b: (0, 0)),   # resident weights
            pl.BlockSpec((1, N_pad), lambda b: (0, 0)),       # resident bias
        ],
        out_specs=pl.BlockSpec((1, nbins, N_pad), lambda b: (b, 0, 0)),
        compiler_params=pltpu.CompilerParams(
            dimension_semantics=("parallel",),
            vmem_limit_bytes=VMEM_LIMIT,
        ),
        cost_estimate=pl.CostEstimate(
            flops=2 * B * OH * OW * K2 * N_pad,
            transcendentals=0,
            bytes_accessed=bytes_accessed),
    )(a, wm_pad, bias_pad)

    out = out[:, :, :c_real]                 # drop channel padding
    feats = []
    off = 0
    for L in levels:
        blk = out[:, off:off + L * L, :]     # (B, L*L, C)
        # -> (B, C, L*L) -> flatten, matching torch's (C, L, L) flatten
        feats.append(jnp.transpose(blk, (0, 2, 1)).reshape(B, c_real * L * L))
        off += L * L
    return jnp.concatenate(feats, axis=1)


# ----------------------------------------------------------------------------
# Model: mini AlexNet-style backbone + spatial pyramid head
# ----------------------------------------------------------------------------
def _prep_conv(w_oihw, b, *, cin_pad=None):
    """PyTorch OIHW weights -> (K_pad, 128) bf16 matmul weights matching the
    NHWC im2col patch order (i*kw + j)*Cin_pad + c, plus (1, 128) f32 bias.
    `cin_pad` zero-pads the input-channel axis (used so conv2 can consume the
    128-lane padded feature map without a lane slice)."""
    Cout, Cin, KH, KW = w_oihw.shape
    cin_p = Cin if cin_pad is None else cin_pad
    N_pad = pl.cdiv(Cout, LANE) * LANE
    wm = jnp.transpose(w_oihw, (2, 3, 1, 0))                       # (KH,KW,Cin,Cout)
    wm = jnp.pad(wm, ((0, 0), (0, 0), (0, cin_p - Cin), (0, N_pad - Cout)))
    wm = wm.reshape(KH * KW * cin_p, N_pad)
    K = wm.shape[0]
    K_pad = pl.cdiv(K, LANE) * LANE
    wm = jnp.pad(wm, ((0, K_pad - K), (0, 0))).astype(jnp.bfloat16)
    bias = jnp.pad(b, (0, N_pad - Cout)).reshape(1, N_pad).astype(jnp.float32)
    return wm, bias


def init_params():
    key = jax.random.PRNGKey(0)
    k1, k2, k3, k4 = jax.random.split(key, 4)
    w1 = jax.random.normal(k1, (COUT1, 3, 5, 5), jnp.float32) * 0.1
    b1 = jax.random.normal(k2, (COUT1,), jnp.float32) * 0.01
    w2 = jax.random.normal(k3, (COUT2, COUT1, 3, 3), jnp.float32) * 0.1
    b2 = jax.random.normal(k4, (COUT2,), jnp.float32) * 0.01
    wm1, bias1 = _prep_conv(w1, b1)                   # Cin=3, K 75 -> 128
    wm2, bias2 = _prep_conv(w2, b2, cin_pad=LANE)     # Cin padded to 128, K=1152
    return {"wm1": wm1, "b1": bias1, "wm2": wm2, "b2": bias2}


def model_with_pyramid_forward(params, x_nchw):
    # NCHW -> NHWC once at the boundary; stay channels-last afterwards.
    x = jnp.transpose(x_nchw, (0, 2, 3, 1)).astype(jnp.bfloat16)
    h = conv1_bias_relu(x, params["wm1"], params["b1"])          # (B,16,16,128)
    feats = conv2_spp_fused(h, params["wm2"], params["b2"],
                            c_real=COUT2, levels=(1, 2, 4))
    return feats                                                 # (B, 32*21) f32


if __name__ == "__main__":
    params = init_params()
    kx = jax.random.split(jax.random.PRNGKey(0), 5)[-1]
    x = jax.random.normal(kx, (2, 3, 32, 32), jnp.float32)

    fwd = jax.jit(model_with_pyramid_forward)
    out = fwd(params, x)
    out = jax.block_until_ready(out)
    assert out.shape == (2, COUT2 * (1 + 4 + 16)), out.shape
    assert bool(jnp.all(jnp.isfinite(out)))
    print("KERNEL_OK")
</pallas_src>

<mosaic_0001>
module attributes {stable_mosaic.version = 11 : i64} {
  func.func @_conv_relu_kernel(%arg0: i32, %arg1: memref<256x128xbf16, #tpu.memory_space<vmem>>, %arg2: memref<128x128xbf16, #tpu.memory_space<vmem>>, %arg3: memref<1x128xf32, #tpu.memory_space<vmem>>, %arg4: memref<256x128xbf16, #tpu.memory_space<vmem>>) attributes {dimension_semantics = [#tpu.dimension_semantics<parallel>], iteration_bounds = array<i64: 2>, scalar_prefetch = 0 : i64, scratch_operands = 0 : i64, tpu.core_type = #tpu.core_type<tc>, window_params = [{transform_indices = @transform_0, window_bounds = array<i64: 256, 128>}, {pipeline_mode = #tpu.pipeline_mode<synchronous>, transform_indices = @transform_1, window_bounds = array<i64: 128, 128>}, {pipeline_mode = #tpu.pipeline_mode<synchronous>, transform_indices = @transform_2, window_bounds = array<i64: 1, 128>}, {transform_indices = @transform_3, window_bounds = array<i64: 256, 128>}]} {
    %c0 = arith.constant 0 : index
    %c0_0 = arith.constant 0 : index
    %0 = vector.load %arg1[%c0, %c0_0] : memref<256x128xbf16, #tpu.memory_space<vmem>>, vector<256x128xbf16>
    %c0_1 = arith.constant 0 : index
    %c0_2 = arith.constant 0 : index
    %1 = vector.load %arg2[%c0_1, %c0_2] : memref<128x128xbf16, #tpu.memory_space<vmem>>, vector<128x128xbf16>
    %cst = arith.constant dense<0.000000e+00> : vector<256x128xf32>
    %2 = tpu.matmul %0, %1, %cst {dimension_numbers = #tpu.dot_dimension_numbers<[1], [0], [0], [1], [0, 0, 1, 1], [], []>} : vector<256x128xbf16>, vector<128x128xbf16>, vector<256x128xf32> -> vector<256x128xf32>
    %c0_3 = arith.constant 0 : index
    %c0_4 = arith.constant 0 : index
    %3 = vector.load %arg3[%c0_3, %c0_4] : memref<1x128xf32, #tpu.memory_space<vmem>>, vector<1x128xf32>
    %4 = vector.broadcast %3 : vector<1x128xf32> to vector<256x128xf32>
    %5 = arith.addf %2, %4 : vector<256x128xf32>
    %cst_5 = arith.constant 0.000000e+00 : f32
    %6 = vector.broadcast %cst_5 : f32 to vector<256x128xf32>
    %7 = arith.maximumf %5, %6 : vector<256x128xf32>
    %8 = arith.truncf %7 : vector<256x128xf32> to vector<256x128xbf16>
    %c0_6 = arith.constant 0 : index
    %c0_7 = arith.constant 0 : index
    %9 = vector.load %arg4[%c0_6, %c0_7] : memref<256x128xbf16, #tpu.memory_space<vmem>>, vector<256x128xbf16>
    tpu.vector_store %arg4[%c0_6, %c0_7], %8 {strides = array<i32>} : memref<256x128xbf16, #tpu.memory_space<vmem>>, vector<256x128xbf16>,
    return
  }
  func.func @transform_0(%arg0: i32) -> (i32, i32) {
    %c0_i32 = arith.constant 0 : i32
    %c0_i32_0 = arith.constant 0 : i32
    return %arg0, %c0_i32 : i32, i32
  }
  func.func @transform_1(%arg0: i32) -> (i32, i32) {
    %c0_i32 = arith.constant 0 : i32
    %c0_i32_0 = arith.constant 0 : i32
    %c0_i32_1 = arith.constant 0 : i32
    return %c0_i32, %c0_i32_0 : i32, i32
  }
  func.func @transform_2(%arg0: i32) -> (i32, i32) {
    %c0_i32 = arith.constant 0 : i32
    %c0_i32_0 = arith.constant 0 : i32
    %c0_i32_1 = arith.constant 0 : i32
    return %c0_i32, %c0_i32_0 : i32, i32
  }
  func.func @transform_3(%arg0: i32) -> (i32, i32) {
    %c0_i32 = arith.constant 0 : i32
    %c0_i32_0 = arith.constant 0 : i32
    return %arg0, %c0_i32 : i32, i32
  }
}

module attributes {stable_mosaic.version = 11 : i64} {
  func.func @kernel(%arg0: i32, %arg1: memref<1x64x1152xbf16, #tpu.memory_space<vmem>>, %arg2: memref<1152x128xbf16, #tpu.memory_space<vmem>>, %arg3: memref<1x128xf32, #tpu.memory_space<vmem>>, %arg4: memref<1x21x128xf32, #tpu.memory_space<vmem>>) attributes {dimension_semantics = [#tpu.dimension_semantics<parallel>], iteration_bounds = array<i64: 2>, scalar_prefetch = 0 : i64, scratch_operands = 0 : i64, tpu.core_type = #tpu.core_type<tc>, window_params = [{transform_indices = @transform_0, window_bounds = array<i64: 1, 64, 1152>}, {pipeline_mode = #tpu.pipeline_mode<synchronous>, transform_indices = @transform_1, window_bounds = array<i64: 1152, 128>}, {pipeline_mode = #tpu.pipeline_mode<synchronous>, transform_indices = @transform_2, window_bounds = array<i64: 1, 128>}, {transform_indices = @transform_3, window_bounds = array<i64: 1, 21, 128>}]} {
    %c0 = arith.constant 0 : index
    %c0_0 = arith.constant 0 : index
    %c0_1 = arith.constant 0 : index
    %0 = vector.load %arg1[%c0, %c0_0, %c0_1] : memref<1x64x1152xbf16, #tpu.memory_space<vmem>>, vector<1x64x1152xbf16>
    %1 = vector.shape_cast %0 : vector<1x64x1152xbf16> to vector<64x1152xbf16>
    %c0_2 = arith.constant 0 : index
    %c0_3 = arith.constant 0 : index
    %2 = vector.load %arg2[%c0_2, %c0_3] : memref<1152x128xbf16, #tpu.memory_space<vmem>>, vector<1152x128xbf16>
    %cst = arith.constant dense<0.000000e+00> : vector<64x128xf32>
    %3 = tpu.matmul %1, %2, %cst {dimension_numbers = #tpu.dot_dimension_numbers<[1], [0], [0], [1], [0, 0, 1, 1], [], []>} : vector<64x1152xbf16>, vector<1152x128xbf16>, vector<64x128xf32> -> vector<64x128xf32>
    %c0_4 = arith.constant 0 : index
    %c0_5 = arith.constant 0 : index
    %4 = vector.load %arg3[%c0_4, %c0_5] : memref<1x128xf32, #tpu.memory_space<vmem>>, vector<1x128xf32>
    %5 = vector.broadcast %4 : vector<1x128xf32> to vector<64x128xf32>
    %6 = arith.addf %3, %5 : vector<64x128xf32>
    %cst_6 = arith.constant 0.000000e+00 : f32
    %7 = vector.broadcast %cst_6 : f32 to vector<64x128xf32>
    %8 = arith.maximumf %6, %7 : vector<64x128xf32>
    %9 = vector.shape_cast %8 : vector<64x128xf32> to vector<8x8x128xf32>
    %10 = vector.extract_strided_slice %9 {offsets = [0, 0, 0], sizes = [2, 2, 128], strides = [1, 1, 1]} : vector<8x8x128xf32> to vector<2x2x128xf32>
    %cst_7 = arith.constant dense<0xFF800000> : vector<2x128xf32>
    %11 = vector.multi_reduction <maximumf>, %10, %cst_7 [0] : vector<2x2x128xf32> to vector<2x128xf32>
    %cst_8 = arith.constant dense<0xFF800000> : vector<128xf32>
    %12 = vector.multi_reduction <maximumf>, %11, %cst_8 [0] : vector<2x128xf32> to vector<128xf32>
    %13 = vector.shape_cast %12 : vector<128xf32> to vector<1x128xf32>
    %14 = vector.extract_strided_slice %9 {offsets = [0, 2, 0], sizes = [2, 2, 128], strides = [1, 1, 1]} : vector<8x8x128xf32> to vector<2x2x128xf32>
    %cst_9 = arith.constant dense<0xFF800000> : vector<2x128xf32>
    %15 = vector.multi_reduction <maximumf>, %14, %cst_9 [0] : vector<2x2x128xf32> to vector<2x128xf32>
    %cst_10 = arith.constant dense<0xFF800000> : vector<128xf32>
    %16 = vector.multi_reduction <maximumf>, %15, %cst_10 [0] : vector<2x128xf32> to vector<128xf32>
    %17 = vector.shape_cast %16 : vector<128xf32> to vector<1x128xf32>
    %18 = vector.extract_strided_slice %9 {offsets = [0, 4, 0], sizes = [2, 2, 128], strides = [1, 1, 1]} : vector<8x8x128xf32> to vector<2x2x128xf32>
    %cst_11 = arith.constant dense<0xFF800000> : vector<2x128xf32>
    %19 = vector.multi_reduction <maximumf>, %18, %cst_11 [0] : vector<2x2x128xf32> to vector<2x128xf32>
    %cst_12 = arith.constant dense<0xFF800000> : vector<128xf32>
    %20 = vector.multi_reduction <maximumf>, %19, %cst_12 [0] : vector<2x128xf32> to vector<128xf32>
    %21 = vector.shape_cast %20 : vector<128xf32> to vector<1x128xf32>
    %22 = vector.extract_strided_slice %9 {offsets = [0, 6, 0], sizes = [2, 2, 128], strides = [1, 1, 1]} : vector<8x8x128xf32> to vector<2x2x128xf32>
    %cst_13 = arith.constant dense<0xFF800000> : vector<2x128xf32>
    %23 = vector.multi_reduction <maximumf>, %22, %cst_13 [0] : vector<2x2x128xf32> to vector<2x128xf32>
    %cst_14 = arith.constant dense<0xFF800000> : vector<128xf32>
    %24 = vector.multi_reduction <maximumf>, %23, %cst_14 [0] : vector<2x128xf32> to vector<128xf32>
    %25 = vector.shape_cast %24 : vector<128xf32> to vector<1x128xf32>
    %26 = vector.extract_strided_slice %9 {offsets = [2, 0, 0], sizes = [2, 2, 128], strides = [1, 1, 1]} : vector<8x8x128xf32> to vector<2x2x128xf32>
    %cst_15 = arith.constant dense<0xFF800000> : vector<2x128xf32>
    %27 = vector.multi_reduction <maximumf>, %26, %cst_15 [0] : vector<2x2x128xf32> to vector<2x128xf32>
    %cst_16 = arith.constant dense<0xFF800000> : vector<128xf32>
    %28 = vector.multi_reduction <maximumf>, %27, %cst_16 [0] : vector<2x128xf32> to vector<128xf32>
    %29 = vector.shape_cast %28 : vector<128xf32> to vector<1x128xf32>
    %30 = vector.extract_strided_slice %9 {offsets = [2, 2, 0], sizes = [2, 2, 128], strides = [1, 1, 1]} : vector<8x8x128xf32> to vector<2x2x128xf32>
    %cst_17 = arith.constant dense<0xFF800000> : vector<2x128xf32>
    %31 = vector.multi_reduction <maximumf>, %30, %cst_17 [0] : vector<2x2x128xf32> to vector<2x128xf32>
    %cst_18 = arith.constant dense<0xFF800000> : vector<128xf32>
    %32 = vector.multi_reduction <maximumf>, %31, %cst_18 [0] : vector<2x128xf32> to vector<128xf32>
    %33 = vector.shape_cast %32 : vector<128xf32> to vector<1x128xf32>
    %34 = vector.extract_strided_slice %9 {offsets = [2, 4, 0], sizes = [2, 2, 128], strides = [1, 1, 1]} : vector<8x8x128xf32> to vector<2x2x128xf32>
    %cst_19 = arith.constant dense<0xFF800000> : vector<2x128xf32>
    %35 = vector.multi_reduction <maximumf>, %34, %cst_19 [0] : vector<2x2x128xf32> to vector<2x128xf32>
    %cst_20 = arith.constant dense<0xFF800000> : vector<128xf32>
    %36 = vector.multi_reduction <maximumf>, %35, %cst_20 [0] : vector<2x128xf32> to vector<128xf32>
    %37 = vector.shape_cast %36 : vector<128xf32> to vector<1x128xf32>
    %38 = vector.extract_strided_slice %9 {offsets = [2, 6, 0], sizes = [2, 2, 128], strides = [1, 1, 1]} : vector<8x8x128xf32> to vector<2x2x128xf32>
    %cst_21 = arith.constant dense<0xFF800000> : vector<2x128xf32>
    %39 = vector.multi_reduction <maximumf>, %38, %cst_21 [0] : vector<2x2x128xf32> to vector<2x128xf32>
    %cst_22 = arith.constant dense<0xFF800000> : vector<128xf32>
    %40 = vector.multi_reduction <maximumf>, %39, %cst_22 [0] : vector<2x128xf32> to vector<128xf32>
    %41 = vector.shape_cast %40 : vector<128xf32> to vector<1x128xf32>
    %42 = vector.extract_strided_slice %9 {offsets = [4, 0, 0], sizes = [2, 2, 128], strides = [1, 1, 1]} : vector<8x8x128xf32> to vector<2x2x128xf32>
    %cst_23 = arith.constant dense<0xFF800000> : vector<2x128xf32>
    %43 = vector.multi_reduction <maximumf>, %42, %cst_23 [0] : vector<2x2x128xf32> to vector<2x128xf32>
    %cst_24 = arith.constant dense<0xFF800000> : vector<128xf32>
    %44 = vector.multi_reduction <maximumf>, %43, %cst_24 [0] : vector<2x128xf32> to vector<128xf32>
    %45 = vector.shape_cast %44 : vector<128xf32> to vector<1x128xf32>
    %46 = vector.extract_strided_slice %9 {offsets = [4, 2, 0], sizes = [2, 2, 128], strides = [1, 1, 1]} : vector<8x8x128xf32> to vector<2x2x128xf32>
    %cst_25 = arith.constant dense<0xFF800000> : vector<2x128xf32>
    %47 = vector.multi_reduction <maximumf>, %46, %cst_25 [0] : vector<2x2x128xf32> to vector<2x128xf32>
    %cst_26 = arith.constant dense<0xFF800000> : vector<128xf32>
    %48 = vector.multi_reduction <maximumf>, %47, %cst_26 [0] : vector<2x128xf32> to vector<128xf32>
    %49 = vector.shape_cast %48 : vector<128xf32> to vector<1x128xf32>
    %50 = vector.extract_strided_slice %9 {offsets = [4, 4, 0], sizes = [2, 2, 128], strides = [1, 1, 1]} : vector<8x8x128xf32> to vector<2x2x128xf32>
    %cst_27 = arith.constant dense<0xFF800000> : vector<2x128xf32>
    %51 = vector.multi_reduction <maximumf>, %50, %cst_27 [0] : vector<2x2x128xf32> to vector<2x128xf32>
    %cst_28 = arith.constant dense<0xFF800000> : vector<128xf32>
    %52 = vector.multi_reduction <maximumf>, %51, %cst_28 [0] : vector<2x128xf32> to vector<128xf32>
    %53 = vector.shape_cast %52 : vector<128xf32> to vector<1x128xf32>
    %54 = vector.extract_strided_slice %9 {offsets = [4, 6, 0], sizes = [2, 2, 128], strides = [1, 1, 1]} : vector<8x8x128xf32> to vector<2x2x128xf32>
    %cst_29 = arith.constant dense<0xFF800000> : vector<2x128xf32>
    %55 = vector.multi_reduction <maximumf>, %54, %cst_29 [0] : vector<2x2x128xf32> to vector<2x128xf32>
    %cst_30 = arith.constant dense<0xFF800000> : vector<128xf32>
    %56 = vector.multi_reduction <maximumf>, %55, %cst_30 [0] : vector<2x128xf32> to vector<128xf32>
    %57 = vector.shape_cast %56 : vector<128xf32> to vector<1x128xf32>
    %58 = vector.extract_strided_slice %9 {offsets = [6, 0, 0], sizes = [2, 2, 128], strides = [1, 1, 1]} : vector<8x8x128xf32> to vector<2x2x128xf32>
    %cst_31 = arith.constant dense<0xFF800000> : vector<2x128xf32>
    %59 = vector.multi_reduction <maximumf>, %58, %cst_31 [0] : vector<2x2x128xf32> to vector<2x128xf32>
    %cst_32 = arith.constant dense<0xFF800000> : vector<128xf32>
    %60 = vector.multi_reduction <maximumf>, %59, %cst_32 [0] : vector<2x128xf32> to vector<128xf32>
    %61 = vector.shape_cast %60 : vector<128xf32> to vector<1x128xf32>
    %62 = vector.extract_strided_slice %9 {offsets = [6, 2, 0], sizes = [2, 2, 128], strides = [1, 1, 1]} : vector<8x8x128xf32> to vector<2x2x128xf32>
    %cst_33 = arith.constant dense<0xFF800000> : vector<2x128xf32>
    %63 = vector.multi_reduction <maximumf>, %62, %cst_33 [0] : vector<2x2x128xf32> to vector<2x128xf32>
    %cst_34 = arith.constant dense<0xFF800000> : vector<128xf32>
    %64 = vector.multi_reduction <maximumf>, %63, %cst_34 [0] : vector<2x128xf32> to vector<128xf32>
    %65 = vector.shape_cast %64 : vector<128xf32> to vector<1x128xf32>
    %66 = vector.extract_strided_slice %9 {offsets = [6, 4, 0], sizes = [2, 2, 128], strides = [1, 1, 1]} : vector<8x8x128xf32> to vector<2x2x128xf32>
    %cst_35 = arith.constant dense<0xFF800000> : vector<2x128xf32>
    %67 = vector.multi_reduction <maximumf>, %66, %cst_35 [0] : vector<2x2x128xf32> to vector<2x128xf32>
    %cst_36 = arith.constant dense<0xFF800000> : vector<128xf32>
    %68 = vector.multi_reduction <maximumf>, %67, %cst_36 [0] : vector<2x128xf32> to vector<128xf32>
    %69 = vector.shape_cast %68 : vector<128xf32> to vector<1x128xf32>
    %70 = vector.extract_strided_slice %9 {offsets = [6, 6, 0], sizes = [2, 2, 128], strides = [1, 1, 1]} : vector<8x8x128xf32> to vector<2x2x128xf32>
    %cst_37 = arith.constant dense<0xFF800000> : vector<2x128xf32>
    %71 = vector.multi_reduction <maximumf>, %70, %cst_37 [0] : vector<2x2x128xf32> to vector<2x128xf32>
    %cst_38 = arith.constant dense<0xFF800000> : vector<128xf32>
    %72 = vector.multi_reduction <maximumf>, %71, %cst_38 [0] : vector<2x128xf32> to vector<128xf32>
    %73 = vector.shape_cast %72 : vector<128xf32> to vector<1x128xf32>
    %74 = arith.maximumf %13, %17 : vector<1x128xf32>
    %75 = arith.maximumf %74, %29 : vector<1x128xf32>
    %76 = arith.maximumf %75, %33 : vector<1x128xf32>
    %77 = arith.maximumf %21, %25 : vector<1x128xf32>
    %78 = arith.maximumf %77, %37 : vector<1x128xf32>
    %79 = arith.maximumf %78, %41 : vector<1x128xf32>
    %80 = arith.maximumf %45, %49 : vector<1x128xf32>
    %81 = arith.maximumf %80, %61 : vector<1x128xf32>
    %82 = arith.maximumf %81, %65 : vector<1x128xf32>
    %83 = arith.maximumf %53, %57 : vector<1x128xf32>
    %84 = arith.maximumf %83, %69 : vector<1x128xf32>
    %85 = arith.maximumf %84, %73 : vector<1x128xf32>
    %86 = arith.maximumf %76, %79 : vector<1x128xf32>
    %87 = arith.maximumf %86, %82 : vector<1x128xf32>
    %88 = arith.maximumf %87, %85 : vector<1x128xf32>
    %89 = tpu.concatenate %88, %76, %79, %82, %85, %13, %17, %21, %25, %29, %33, %37, %41, %45, %49, %53 in 0 : vector<1x128xf32>, vector<1x128xf32>, vector<1x128xf32>, vector<1x128xf32>, vector<1x128xf32>, vector<1x128xf32>, vector<1x128xf32>, vector<1x128xf32>, vector<1x128xf32>, vector<1x128xf32>, vector<1x128xf32>, vector<1x128xf32>, vector<1x128xf32>, vector<1x128xf32>, vector<1x128xf32>, vector<1x128xf32> -> vector<16x128xf32>
    %90 = tpu.concatenate %57, %61, %65, %69, %73 in 0 : vector<1x128xf32>, vector<1x128xf32>, vector<1x128xf32>, vector<1x128xf32>, vector<1x128xf32> -> vector<5x128xf32>
    %91 = tpu.concatenate %89, %90 in 0 : vector<16x128xf32>, vector<5x128xf32> -> vector<21x128xf32>
    %c0_39 = arith.constant 0 : index
    %c0_40 = arith.constant 0 : index
    %c0_41 = arith.constant 0 : index
    %92 = vector.load %arg4[%c0_39, %c0_40, %c0_41] : memref<1x21x128xf32, #tpu.memory_space<vmem>>, vector<1x21x128xf32>
    %93 = vector.shape_cast %92 : vector<1x21x128xf32> to vector<21x128xf32>
    %94 = vector.shape_cast %91 : vector<21x128xf32> to vector<1x21x128xf32>
    tpu.vector_store %arg4[%c0_39, %c0_40, %c0_41], %94 {strides = array<i32>} : memref<1x21x128xf32, #tpu.memory_space<vmem>>, vector<1x21x128xf32>,
    return
  }
  func.func @transform_0(%arg0: i32) -> (i32, i32, i32) {
    %c0_i32 = arith.constant 0 : i32
    %c0_i32_0 = arith.constant 0 : i32
    %c0_i32_1 = arith.constant 0 : i32
    return %arg0, %c0_i32, %c0_i32_0 : i32, i32, i32
  }
  func.func @transform_1(%arg0: i32) -> (i32, i32) {
    %c0_i32 = arith.constant 0 : i32
    %c0_i32_0 = arith.constant 0 : i32
    %c0_i32_1 = arith.constant 0 : i32
    return %c0_i32, %c0_i32_0 : i32, i32
  }
  func.func @transform_2(%arg0: i32) -> (i32, i32) {
    %c0_i32 = arith.constant 0 : i32
    %c0_i32_0 = arith.constant 0 : i32
    %c0_i32_1 = arith.constant 0 : i32
    return %c0_i32, %c0_i32_0 : i32, i32
  }
  func.func @transform_3(%arg0: i32) -> (i32, i32, i32) {
    %c0_i32 = arith.constant 0 : i32
    %c0_i32_0 = arith.constant 0 : i32
    %c0_i32_1 = arith.constant 0 : i32
    return %arg0, %c0_i32, %c0_i32_0 : i32, i32, i32
  }
}

</mosaic_0001>

<bundles_post_ra>
// kernel: model_with_pyramid_forward.2
= control target key start
LH: loop header
LB: loop body
LE: loop exit
PB: predicated region body
PF: predicated region fallthrough
CT: control target
= control target key end

     0   :  { %s898_s12 = smov 0   ;;  %s1019_s0 = inlined_call_operand.vmem [shape: bf16[512,128], index: 0, kind: input, shape index: {}]   ;;  %s1020_s1 = inlined_call_operand.vmem [shape: bf16[128,128], index: 1, kind: input, shape index: {}]   ;;  %s1021_s2 = inlined_call_operand.vmem [shape: f32[1,128], index: 2, kind: input, shape index: {}]   ;;  %s1022_s3 = inlined_call_operand.vmem [shape: bf16[512,128], index: 3, kind: output, shape index: {}]  }
   0x1 LB: > { %s611_s13 = sadd.s32 4294967295, %s876_s12   ;;  %p615_p0 = scmp.ge.s32.totalorder %s876_s12, 1  ;;  %s876_s12 = sphi %s898_s12, %s13_s12  }
   0x2   : > { %p138_p1 = scmp.lt.s32.totalorder %s876_s12, 3 }
   0x4   : > { %p139_p2 = pnand %p615_p0, %p138_p1 }
   0x5   : > { %s616_s22 = sshll.u32 (!%p139_p2), %s611_s13, 5 }
   0x6   : > { %142 = sbr.rel (%p139_p2) target bundleno = 240 (0xf0), region = 32  ;;  %p163_p3 = scmp.lt.s32.totalorder (!%p139_p2), %s616_s22, 63 }
   0xb   : > { %v741_v0 = vld [vmem:[%s1020_s1 + $0x38] sm:$0xff]  ;;  %v740_v1 = vld [vmem:[%s1020_s1 + $0x30] sm:$0xff]  ;;  %v739_v2 = vld [vmem:[%s1020_s1 + $0x28] sm:$0xff]  ;;  %s1024_s22 = smov (!%p163_p3, %s616_s22), 63 }
   0xc   : > { %370 = vmatpush.bf16.msra.mxu0 %v741_v0  ;;  %837 = vmatpush.bf16.msra.mxu1 %v741_v0  ;;  %v738_v3 = vld [vmem:[%s1020_s1 + $0x20] sm:$0xff]  ;;  %v737_v4 = vld [vmem:[%s1020_s1 + $0x18] sm:$0xff]  ;;  %v736_v5 = vld [vmem:[%s1020_s1 + $0x10] sm:$0xff]  ;;  %s617_s29 = sshll.u32 %s1024_s22, 2 }
   0xd   : > { %838 = vmatpush.bf16.msra.mxu2 %v741_v0  ;;  %839 = vmatpush.bf16.msra.mxu3 %v741_v0  ;;  %v735_v6 = vld [vmem:[%s1020_s1 + $0x8] sm:$0xff]  ;;  %v734_v7 = vld [vmem:[%s1020_s1] sm:$0xff]  ;;  %s938_s7 = scalar_lea.vmem %s1019_s0, %s617_s29  ;;  %s970_s13 = scalar_lea.vmem %s1022_s3, %s617_s29 }
   0xe   : > { %v718_v8 = vld [vmem:[%s938_s7] sm:$0xff]  ;;  %v719_v12 = vld [vmem:[%s938_s7 + $0x8] sm:$0xff]  ;;  %v720_v16 = vld [vmem:[%s938_s7 + $0x10] sm:$0xff] }
   0xf   : > { %v722_v9 = vld [vmem:[%s938_s7 + $0x20] sm:$0xff]  ;;  %v723_v13 = vld [vmem:[%s938_s7 + $0x28] sm:$0xff]  ;;  %v724_v17 = vld [vmem:[%s938_s7 + $0x30] sm:$0xff] }
  0x10   : > { %371 = vmatpush.bf16.msra.mxu0 %v740_v1  ;;  %840 = vmatpush.bf16.msra.mxu1 %v740_v1  ;;  %v726_v10 = vld [vmem:[%s938_s7 + $0x40] sm:$0xff]  ;;  %v727_v14 = vld [vmem:[%s938_s7 + $0x48] sm:$0xff]  ;;  %v728_v18 = vld [vmem:[%s938_s7 + $0x50] sm:$0xff] }
  0x11   : > { %841 = vmatpush.bf16.msra.mxu2 %v740_v1  ;;  %842 = vmatpush.bf16.msra.mxu3 %v740_v1  ;;  %v730_v11 = vld [vmem:[%s938_s7 + $0x60] sm:$0xff]  ;;  %v731_v15 = vld [vmem:[%s938_s7 + $0x68] sm:$0xff]  ;;  %v732_v19 = vld [vmem:[%s938_s7 + $0x70] sm:$0xff] }
  0x12   : > { %v721_v20 = vld [vmem:[%s938_s7 + $0x18] sm:$0xff]  ;;  %v959_v26 = vld [vmem:[%s1021_s2] ss:$0 sm:$0xff] }
  0x13   : > { %v725_v21 = vld [vmem:[%s938_s7 + $0x38] sm:$0xff] }
  0x14   : > { %372 = vmatpush.bf16.msra.mxu0 %v739_v2  ;;  %843 = vmatpush.bf16.msra.mxu1 %v739_v2  ;;  %v729_v22 = vld [vmem:[%s938_s7 + $0x58] sm:$0xff] }
  0x15   : > { %844 = vmatpush.bf16.msra.mxu2 %v739_v2  ;;  %845 = vmatpush.bf16.msra.mxu3 %v739_v2  ;;  %v733_v23 = vld [vmem:[%s938_s7 + $0x78] sm:$0xff] }
  0x18   : > { %373 = vmatpush.bf16.msra.mxu0 %v738_v3  ;;  %846 = vmatpush.bf16.msra.mxu1 %v738_v3 }
  0x19   : > { %847 = vmatpush.bf16.msra.mxu2 %v738_v3  ;;  %848 = vmatpush.bf16.msra.mxu3 %v738_v3 }
  0x1c   : > { %374 = vmatpush.bf16.msra.mxu0 %v737_v4  ;;  %849 = vmatpush.bf16.msra.mxu1 %v737_v4 }
  0x1d   : > { %850 = vmatpush.bf16.msra.mxu2 %v737_v4  ;;  %851 = vmatpush.bf16.msra.mxu3 %v737_v4 }
  0x20   : > { %375 = vmatpush.bf16.msra.mxu0 %v736_v5  ;;  %852 = vmatpush.bf16.msra.mxu1 %v736_v5 }
  0x21   : > { %853 = vmatpush.bf16.msra.mxu2 %v736_v5  ;;  %854 = vmatpush.bf16.msra.mxu3 %v736_v5 }
  0x24   : > { %376 = vmatpush.bf16.msra.mxu0 %v735_v6  ;;  %855 = vmatpush.bf16.msra.mxu1 %v735_v6 }
  0x25   : > { %856 = vmatpush.bf16.msra.mxu2 %v735_v6  ;;  %857 = vmatpush.bf16.msra.mxu3 %v735_v6 }
  0x28   : > { %377 = vmatpush.bf16.msra.mxu0 %v734_v7  ;;  %858 = vmatpush.bf16.msra.mxu1 %v734_v7 }
  0x29   : > { %859 = vmatpush.bf16.msra.mxu2 %v734_v7  ;;  %860 = vmatpush.bf16.msra.mxu3 %v734_v7 }
  0x2b   : > { %378 = vmatmul.bf16.vlgmr.msra.gmra.mxu0 %v718_v8  ;;  %398 = vmatmul.bf16.vlgmr.msra.gmra.mxu1 %v722_v9 }
  0x2c   : > { %418 = vmatmul.bf16.vlgmr.msra.gmra.mxu2 %v726_v10  ;;  %438 = vmatmul.bf16.vlgmr.msra.gmra.mxu3 %v730_v11 }
  0x3b   : > { %383 = vmatmul.bf16.gmra.mxu0 %v719_v12  ;;  %403 = vmatmul.bf16.gmra.mxu1 %v723_v13 }
  0x3c   : > { %423 = vmatmul.bf16.gmra.mxu2 %v727_v14  ;;  %443 = vmatmul.bf16.gmra.mxu3 %v731_v15 }
  0x4b   : > { %388 = vmatmul.bf16.gmra.mxu0 %v720_v16  ;;  %408 = vmatmul.bf16.gmra.mxu1 %v724_v17 }
  0x4c   : > { %428 = vmatmul.bf16.gmra.mxu2 %v728_v18  ;;  %448 = vmatmul.bf16.gmra.mxu3 %v732_v19 }
  0x5b   : > { %393 = vmatmul.bf16.gmra.mxu0 %v721_v20  ;;  %413 = vmatmul.bf16.gmra.mxu1 %v725_v21 }
  0x5c   : > { %433 = vmatmul.bf16.gmra.mxu2 %v729_v22  ;;  %453 = vmatmul.bf16.gmra.mxu3 %v733_v23 }
  0xa8   : > { %v379_v24 = vpop.f32.mrf.mxu0  ;;  %v399_v25 = vpop.f32.mrf.mxu1 }
  0xa9   : > { %v380_v27 = vadd.f32 %v959_v26, %v379_v24  ;;  %v400_v28 = vadd.f32 %v959_v26, %v399_v25 }
  0xab   : > { %v459_v35 = vmax.f32 %v380_v27, 0.0  ;;  %v467_v36 = vmax.f32 %v400_v28, 0.0 }
  0xaf   : > { %v419_v29 = vpop.f32.mrf.mxu2  ;;  %v439_v30 = vpop.f32.mrf.mxu3 }
  0xb0   : > { %v381_v31 = vpop.f32.mrf.mxu0  ;;  %v401_v32 = vpop.f32.mrf.mxu1  ;;  %v420_v41 = vadd.f32 %v959_v26, %v419_v29  ;;  %v440_v42 = vadd.f32 %v959_v26, %v439_v30 }
  0xb1   : > { %v382_v33 = vadd.f32 %v959_v26, %v381_v31  ;;  %v402_v34 = vadd.f32 %v959_v26, %v401_v32 }
  0xb2   : > { %v475_v49 = vmax.f32 %v420_v41, 0.0  ;;  %v483_v50 = vmax.f32 %v440_v42, 0.0 }
  0xb3   : > { %v460_v37 = vmax.f32 %v382_v33, 0.0  ;;  %v468_v38 = vmax.f32 %v402_v34, 0.0 }
  0xb5   : > { %v745_v39 = vpack.c.bf16 %v460_v37, %v459_v35  ;;  %v765_v40 = vpack.c.bf16 %v468_v38, %v467_v36 }
  0xb7   : > { %746 = vst [vmem:[%s970_s13] sm:$0xff] %v745_v39   ;;  %v421_v43 = vpop.f32.mrf.mxu2  ;;  %v441_v44 = vpop.f32.mrf.mxu3 }
  0xb8   : > { %825 = vst [vmem:[%s970_s13 + $0x20] sm:$0xff] %v765_v40   ;;  %v422_v45 = vadd.f32 %v959_v26, %v421_v43  ;;  %v442_v46 = vadd.f32 %v959_v26, %v441_v44  ;;  %v384_v47 = vpop.f32.mrf.mxu0  ;;  %v404_v48 = vpop.f32.mrf.mxu1 }
  0xb9   : > { %v385_v55 = vadd.f32 %v959_v26, %v384_v47  ;;  %v405_v56 = vadd.f32 %v959_v26, %v404_v48 }
  0xba   : > { %v476_v51 = vmax.f32 %v422_v45, 0.0  ;;  %v484_v52 = vmax.f32 %v442_v46, 0.0 }
  0xbb   : > { %v461_v63 = vmax.f32 %v385_v55, 0.0  ;;  %v469_v0 = vmax.f32 %v405_v56, 0.0 }
  0xbc   : > { %v785_v53 = vpack.c.bf16 %v476_v51, %v475_v49  ;;  %v805_v54 = vpack.c.bf16 %v484_v52, %v483_v50 }
  0xbe   : > { %829 = vst [vmem:[%s970_s13 + $0x40] sm:$0xff] %v785_v53  }
  0xbf   : > { %833 = vst [vmem:[%s970_s13 + $0x60] sm:$0xff] %v805_v54   ;;  %v424_v57 = vpop.f32.mrf.mxu2  ;;  %v444_v58 = vpop.f32.mrf.mxu3 }
  0xc0   : > { %v386_v59 = vpop.f32.mrf.mxu0  ;;  %v406_v60 = vpop.f32.mrf.mxu1  ;;  %v425_v5 = vadd.f32 %v959_v26, %v424_v57  ;;  %v445_v6 = vadd.f32 %v959_v26, %v444_v58 }
  0xc1   : > { %v387_v61 = vadd.f32 %v959_v26, %v386_v59  ;;  %v407_v62 = vadd.f32 %v959_v26, %v406_v60 }
  0xc2   : > { %v477_v13 = vmax.f32 %v425_v5, 0.0  ;;  %v485_v14 = vmax.f32 %v445_v6, 0.0 }
  0xc3   : > { %v462_v1 = vmax.f32 %v387_v61, 0.0  ;;  %v470_v2 = vmax.f32 %v407_v62, 0.0 }
  0xc5   : > { %v750_v3 = vpack.c.bf16 %v462_v1, %v461_v63  ;;  %v770_v4 = vpack.c.bf16 %v470_v2, %v469_v0 }
  0xc7   : > { %822 = vst [vmem:[%s970_s13 + $0x8] sm:$0xff] %v750_v3   ;;  %v426_v7 = vpop.f32.mrf.mxu2  ;;  %v446_v8 = vpop.f32.mrf.mxu3 }
  0xc8   : > { %826 = vst [vmem:[%s970_s13 + $0x28] sm:$0xff] %v770_v4   ;;  %v427_v9 = vadd.f32 %v959_v26, %v426_v7  ;;  %v447_v10 = vadd.f32 %v959_v26, %v446_v8  ;;  %v389_v11 = vpop.f32.mrf.mxu0  ;;  %v409_v12 = vpop.f32.mrf.mxu1 }
  0xc9   : > { %v390_v19 = vadd.f32 %v959_v26, %v389_v11  ;;  %v410_v20 = vadd.f32 %v959_v26, %v409_v12 }
  0xca   : > { %v478_v15 = vmax.f32 %v427_v9, 0.0  ;;  %v486_v16 = vmax.f32 %v447_v10, 0.0 }
  0xcb   : > { %v463_v28 = vmax.f32 %v390_v19, 0.0  ;;  %v471_v29 = vmax.f32 %v410_v20, 0.0 }
  0xcc   : > { %v790_v17 = vpack.c.bf16 %v478_v15, %v477_v13  ;;  %v810_v18 = vpack.c.bf16 %v486_v16, %v485_v14 }
  0xce   : > { %830 = vst [vmem:[%s970_s13 + $0x48] sm:$0xff] %v790_v17  }
  0xcf   : > { %834 = vst [vmem:[%s970_s13 + $0x68] sm:$0xff] %v810_v18   ;;  %v429_v21 = vpop.f32.mrf.mxu2  ;;  %v449_v22 = vpop.f32.mrf.mxu3 }
  0xd0   : > { %v391_v23 = vpop.f32.mrf.mxu0  ;;  %v411_v24 = vpop.f32.mrf.mxu1  ;;  %v430_v34 = vadd.f32 %v959_v26, %v429_v21  ;;  %v450_v35 = vadd.f32 %v959_v26, %v449_v22 }
  0xd1   : > { %v392_v25 = vadd.f32 %v959_v26, %v391_v23  ;;  %v412_v27 = vadd.f32 %v959_v26, %v411_v24 }
  0xd2   : > { %v479_v42 = vmax.f32 %v430_v34, 0.0  ;;  %v487_v43 = vmax.f32 %v450_v35, 0.0 }
  0xd3   : > { %v464_v30 = vmax.f32 %v392_v25, 0.0  ;;  %v472_v31 = vmax.f32 %v412_v27, 0.0 }
  0xd5   : > { %v755_v32 = vpack.c.bf16 %v464_v30, %v463_v28  ;;  %v775_v33 = vpack.c.bf16 %v472_v31, %v471_v29 }
  0xd7   : > { %823 = vst [vmem:[%s970_s13 + $0x10] sm:$0xff] %v755_v32   ;;  %v431_v36 = vpop.f32.mrf.mxu2  ;;  %v451_v37 = vpop.f32.mrf.mxu3 }
  0xd8   : > { %827 = vst [vmem:[%s970_s13 + $0x30] sm:$0xff] %v775_v33   ;;  %v432_v38 = vadd.f32 %v959_v26, %v431_v36  ;;  %v452_v39 = vadd.f32 %v959_v26, %v451_v37  ;;  %v394_v40 = vpop.f32.mrf.mxu0  ;;  %v414_v41 = vpop.f32.mrf.mxu1 }
  0xd9   : > { %v395_v48 = vadd.f32 %v959_v26, %v394_v40  ;;  %v415_v49 = vadd.f32 %v959_v26, %v414_v41 }
  0xda   : > { %v480_v44 = vmax.f32 %v432_v38, 0.0  ;;  %v488_v45 = vmax.f32 %v452_v39, 0.0 }
  0xdb   : > { %v465_v56 = vmax.f32 %v395_v48, 0.0  ;;  %v473_v57 = vmax.f32 %v415_v49, 0.0 }
  0xdc   : > { %v795_v46 = vpack.c.bf16 %v480_v44, %v479_v42  ;;  %v815_v47 = vpack.c.bf16 %v488_v45, %v487_v43 }
  0xde   : > { %831 = vst [vmem:[%s970_s13 + $0x50] sm:$0xff] %v795_v46  }
  0xdf   : > { %835 = vst [vmem:[%s970_s13 + $0x70] sm:$0xff] %v815_v47   ;;  %v434_v50 = vpop.f32.mrf.mxu2  ;;  %v454_v51 = vpop.f32.mrf.mxu3 }
  0xe0   : > { %v396_v52 = vpop.f32.mrf.mxu0  ;;  %v416_v53 = vpop.f32.mrf.mxu1  ;;  %v435_v62 = vadd.f32 %v959_v26, %v434_v50  ;;  %v455_v63 = vadd.f32 %v959_v26, %v454_v51 }
  0xe1   : > { %v397_v54 = vadd.f32 %v959_v26, %v396_v52  ;;  %v417_v55 = vadd.f32 %v959_v26, %v416_v53 }
  0xe2   : > { %v481_v4 = vmax.f32 %v435_v62, 0.0  ;;  %v489_v5 = vmax.f32 %v455_v63, 0.0 }
  0xe3   : > { %v466_v58 = vmax.f32 %v397_v54, 0.0  ;;  %v474_v59 = vmax.f32 %v417_v55, 0.0 }
  0xe5   : > { %v760_v60 = vpack.c.bf16 %v466_v58, %v465_v56  ;;  %v780_v61 = vpack.c.bf16 %v474_v59, %v473_v57 }
  0xe7   : > { %824 = vst [vmem:[%s970_s13 + $0x18] sm:$0xff] %v760_v60   ;;  %v436_v0 = vpop.f32.mrf.mxu2  ;;  %v456_v1 = vpop.f32.mrf.mxu3 }
  0xe8   : > { %828 = vst [vmem:[%s970_s13 + $0x38] sm:$0xff] %v780_v61   ;;  %v437_v2 = vadd.f32 %v959_v26, %v436_v0  ;;  %v457_v3 = vadd.f32 %v959_v26, %v456_v1 }
  0xea   : > { %v482_v6 = vmax.f32 %v437_v2, 0.0  ;;  %v490_v7 = vmax.f32 %v457_v3, 0.0 }
  0xec   : > { %v800_v8 = vpack.c.bf16 %v482_v6, %v481_v4  ;;  %v820_v9 = vpack.c.bf16 %v490_v7, %v489_v5 }
  0xee   : > { %832 = vst [vmem:[%s970_s13 + $0x58] sm:$0xff] %v800_v8  }
  0xef   : > { %836 = vst [vmem:[%s970_s13 + $0x78] sm:$0xff] %v820_v9  }
  0xf0 PF: > { %s13_s12 = sadd.s32 1, %s876_s12  }
  0xf1   : > { %p10_p4 = scmp.ge.s32.totalorder %s13_s12, 4  }
  0xf3   :  { %12 = sbr.rel (!%p10_p4) target bundleno = 1 (0x1), region = 62 }

// kernel: model_with_pyramid_forward.3
= control target key start
LH: loop header
LB: loop body
LE: loop exit
PB: predicated region body
PF: predicated region fallthrough
CT: control target
= control target key end

     0   :  { %s2109_s12 = smov 0   ;;  %s2570_s0 = inlined_call_operand.vmem [shape: bf16[2,64,1152], index: 0, kind: input, shape index: {}]   ;;  %s2571_s1 = inlined_call_operand.vmem [shape: bf16[1152,128], index: 1, kind: input, shape index: {}]   ;;  %s2572_s2 = inlined_call_operand.vmem [shape: f32[1,128], index: 2, kind: input, shape index: {}]   ;;  %s2573_s3 = inlined_call_operand.vmem [shape: f32[2,21,128], index: 3, kind: output, shape index: {}]  }
   0x1 LB: > { %s1505_s13 = sadd.s32 4294967295, %s2087_s12   ;;  %p1509_p0 = scmp.ge.s32.totalorder %s2087_s12, 1  ;;  %s2087_s12 = sphi %s2109_s12, %s13_s12  }
   0x2   : > { %p137_p1 = scmp.lt.s32.totalorder %s2087_s12, 3 }
   0x4   : > { %p138_p2 = pnand %p1509_p0, %p137_p1 }
   0x5   : > { %p161_p3 = scmp.lt.s32.totalorder (!%p138_p2), %s1505_s13, 1 }
   0x6   : > { %141 = sbr.rel (%p138_p2) target bundleno = 364 (0x16c), region = 32 }
   0xb   : > { %v1989_v0 = vld [vmem:[%s2571_s1 + $0x38] sm:$0xff]  ;;  %v1988_v2 = vld [vmem:[%s2571_s1 + $0x30] sm:$0xff]  ;;  %v1987_v6 = vld [vmem:[%s2571_s1 + $0x28] sm:$0xff]  ;;  %s2575_s13 = smov (!%p161_p3, %s1505_s13), 1  ;;  %vm1244_vm0 = vcmask 1041408   ;;  %vm1255_vm1 = vcmask 1043458  }
   0xc   : > { %v2005_v1 = vld [vmem:[%s2571_s1 + $0xb8] sm:$0xff]  ;;  %2054 = vmatpush.bf16.msra.mxu1 %v1989_v0  ;;  %975 = vmatpush.bf16.msra.mxu0 %v1989_v0  ;;  %v2004_v3 = vld [vmem:[%s2571_s1 + $0xb0] sm:$0xff]  ;;  %v2003_v7 = vld [vmem:[%s2571_s1 + $0xa8] sm:$0xff]  ;;  %s2070_s21 = smul.u32 288, %s2575_s13  ;;  %vm1266_vm2 = vcmask 1045508   ;;  %vm1277_vm3 = vcmask 1047558  }
   0xd   : > { %1033 = vmatpush.bf16.msra.mxu2 %v2005_v1  ;;  %v2013_v4 = vld [vmem:[%s2571_s1 + $0xf8] sm:$0xff]  ;;  %v2012_v5 = vld [vmem:[%s2571_s1 + $0xf0] sm:$0xff]  ;;  %v2011_v8 = vld [vmem:[%s2571_s1 + $0xe8] sm:$0xff]  ;;  %vm1423_vm4 = vcmask 1040384   ;;  %vm1426_vm5 = vcmask 1042432   ;;  %vm1428_vm6 = vcmask 1043456  }
   0xe   : > { %1062 = vmatpush.bf16.msra.mxu3 %v2013_v4  ;;  %v1986_v9 = vld [vmem:[%s2571_s1 + $0x20] sm:$0xff]  ;;  %v1985_v12 = vld [vmem:[%s2571_s1 + $0x18] sm:$0xff]  ;;  %v1984_v15 = vld [vmem:[%s2571_s1 + $0x10] sm:$0xff]  ;;  %s2184_s30 = scalar_lea.vmem %s2570_s0, %s2070_s21  ;;  %vm1430_vm7 = vcmask 1044480   ;;  %vm1432_vm8 = vcmask 1045504   ;;  %vm1434_vm9 = vcmask 1046528  }
   0xf   : > { %v2002_v10 = vld [vmem:[%s2571_s1 + $0xa0] sm:$0xff]  ;;  %v2001_v13 = vld [vmem:[%s2571_s1 + $0x98] sm:$0xff]  ;;  %v2000_v16 = vld [vmem:[%s2571_s1 + $0x90] sm:$0xff] }
  0x10   : > { %2055 = vmatpush.bf16.msra.mxu1 %v1988_v2  ;;  %976 = vmatpush.bf16.msra.mxu0 %v1988_v2  ;;  %v2010_v11 = vld [vmem:[%s2571_s1 + $0xe0] sm:$0xff]  ;;  %v2009_v14 = vld [vmem:[%s2571_s1 + $0xd8] sm:$0xff]  ;;  %v2008_v17 = vld [vmem:[%s2571_s1 + $0xd0] sm:$0xff] }
  0x11   : > { %1034 = vmatpush.bf16.msra.mxu2 %v2004_v3  ;;  %v1983_v18 = vld [vmem:[%s2571_s1 + $0x8] sm:$0xff]  ;;  %v1982_v20 = vld [vmem:[%s2571_s1] sm:$0xff]  ;;  %v1586_v21 = vld [vmem:[%s2184_s30 + $0x90] sm:$0xf] }
  0x12   : > { %1063 = vmatpush.bf16.msra.mxu3 %v2012_v5  ;;  %v1999_v19 = vld [vmem:[%s2571_s1 + $0x88] sm:$0xff]  ;;  %v1997_v22 = vld [vmem:[%s2571_s1 + $0x78] sm:$0xff]  ;;  %v1968_v24 = vld [vmem:[%s2184_s30 + $0xb0] sm:$0xf0] }
  0x13   : > { %v2007_v23 = vld [vmem:[%s2571_s1 + $0xc8] sm:$0xff]  ;;  %v1514_v25 = vld [vmem:[%s2184_s30] sm:$0xf]  ;;  %v1950_v26 = vld [vmem:[%s2184_s30 + $0x20] sm:$0xf0]  ;;  %v1587_v32 = vor.u32 %v1968_v24, %v1586_v21 }
  0x14   : > { %2056 = vmatpush.bf16.msra.mxu1 %v1987_v6  ;;  %977 = vmatpush.bf16.msra.mxu0 %v1987_v6  ;;  %v1998_v27 = vld [vmem:[%s2571_s1 + $0x80] sm:$0xff]  ;;  %v1522_v28 = vld [vmem:[%s2184_s30 + $0x8] sm:$0xf]  ;;  %v1951_v29 = vld [vmem:[%s2184_s30 + $0x28] sm:$0xf0]  ;;  %v1515_v33 = vor.u32 %v1950_v26, %v1514_v25 }
  0x15   : > { %1035 = vmatpush.bf16.msra.mxu2 %v2003_v7  ;;  %v2021_v30 = vld [vmem:[%s2571_s1 + $0x138] sm:$0xff]  ;;  %v1523_v34 = vor.u32 %v1951_v29, %v1522_v28  ;;  %v2006_v35 = vld [vmem:[%s2571_s1 + $0xc0] sm:$0xff]  ;;  %v1947_v36 = vld [vmem:[%s2184_s30 + $0xc] sm:$0xf] }
  0x16   : > { %1064 = vmatpush.bf16.msra.mxu3 %v2011_v8  ;;  %v2037_v31 = vld [vmem:[%s2571_s1 + $0x1b8] sm:$0xff]  ;;  %v1524_v37 = vld [vmem:[%s2184_s30 + $0x2c] sm:$0xf0]  ;;  %v1995_v43 = vld [vmem:[%s2571_s1 + $0x68] sm:$0xff] }
  0x17   : > { %v1996_v38 = vld [vmem:[%s2571_s1 + $0x70] sm:$0xff]  ;;  %v2045_v39 = vld [vmem:[%s2571_s1 + $0x1f8] sm:$0xff]  ;;  %v1527_v42 = vor.u32 %v1947_v36, %v1524_v37  ;;  %v2019_v45 = vld [vmem:[%s2571_s1 + $0x128] sm:$0xff] }
  0x18   : > { %2057 = vmatpush.bf16.msra.mxu1 %v1986_v9  ;;  %978 = vmatpush.bf16.msra.mxu0 %v1986_v9  ;;  %v2020_v40 = vld [vmem:[%s2571_s1 + $0x130] sm:$0xff]  ;;  %v2035_v46 = vld [vmem:[%s2571_s1 + $0x1a8] sm:$0xff]  ;;  %v1994_v47 = vld [vmem:[%s2571_s1 + $0x60] sm:$0xff] }
  0x19   : > { %1036 = vmatpush.bf16.msra.mxu2 %v2002_v10  ;;  %v2036_v41 = vld [vmem:[%s2571_s1 + $0x1b0] sm:$0xff]  ;;  %v2043_v48 = vld [vmem:[%s2571_s1 + $0x1e8] sm:$0xff]  ;;  %v2018_v49 = vld [vmem:[%s2571_s1 + $0x120] sm:$0xff] }
  0x1a   : > { %1065 = vmatpush.bf16.msra.mxu3 %v2010_v11  ;;  %v2044_v44 = vld [vmem:[%s2571_s1 + $0x1f0] sm:$0xff]  ;;  %v2034_v50 = vld [vmem:[%s2571_s1 + $0x1a0] sm:$0xff]  ;;  %v1622_v51 = vld [vmem:[%s2184_s30 + $0xd8] sm:$0xf] }
  0x1b   : > { %v1977_v52 = vld [vmem:[%s2184_s30 + $0xf8] sm:$0xf0]  ;;  %v1550_v53 = vld [vmem:[%s2184_s30 + $0x48] sm:$0xf]  ;;  %v1959_v54 = vld [vmem:[%s2184_s30 + $0x68] sm:$0xf0] }
  0x1c   : > { %2058 = vmatpush.bf16.msra.mxu1 %v1985_v12  ;;  %979 = vmatpush.bf16.msra.mxu0 %v1985_v12  ;;  %v1993_v55 = vld [vmem:[%s2571_s1 + $0x58] sm:$0xff]  ;;  %v1558_v56 = vld [vmem:[%s2184_s30 + $0x50] sm:$0xf]  ;;  %v1960_v57 = vld [vmem:[%s2184_s30 + $0x70] sm:$0xf0]  ;;  %v1623_v59 = vor.u32 %v1977_v52, %v1622_v51  ;;  %v1551_v60 = vor.u32 %v1959_v54, %v1550_v53 }
  0x1d   : > { %1037 = vmatpush.bf16.msra.mxu2 %v2001_v13  ;;  %v2017_v58 = vld [vmem:[%s2571_s1 + $0x118] sm:$0xff]  ;;  %v1559_v61 = vor.u32 %v1960_v57, %v1558_v56  ;;  %v1956_v62 = vld [vmem:[%s2184_s30 + $0x54] sm:$0xf]  ;;  %v1991_v4 = vld [vmem:[%s2571_s1 + $0x48] sm:$0xff] }
  0x1e   : > { %1066 = vmatpush.bf16.msra.mxu3 %v2009_v14  ;;  %v1560_v63 = vld [vmem:[%s2184_s30 + $0x74] sm:$0xf0]  ;;  %v1992_v0 = vld [vmem:[%s2571_s1 + $0x50] sm:$0xff]  ;;  %v2042_v5 = vld [vmem:[%s2571_s1 + $0x1e0] sm:$0xff] }
  0x1f   : > { %v2016_v1 = vld [vmem:[%s2571_s1 + $0x110] sm:$0xff]  ;;  %v1563_v2 = vor.u32 %v1956_v62, %v1560_v63  ;;  %v2033_v3 = vld [vmem:[%s2571_s1 + $0x198] sm:$0xff]  ;;  %v2015_v6 = vld [vmem:[%s2571_s1 + $0x108] sm:$0xff] }
  0x20   : > { %2059 = vmatpush.bf16.msra.mxu1 %v1984_v15  ;;  %980 = vmatpush.bf16.msra.mxu0 %v1984_v15  ;;  %v2032_v7 = vld [vmem:[%s2571_s1 + $0x190] sm:$0xff]  ;;  %v2041_v8 = vld [vmem:[%s2571_s1 + $0x1d8] sm:$0xff]  ;;  %v1990_v9 = vld [vmem:[%s2571_s1 + $0x40] sm:$0xff] }
  0x21   : > { %1038 = vmatpush.bf16.msra.mxu2 %v2000_v16  ;;  %v2029_v10 = vld [vmem:[%s2571_s1 + $0x178] sm:$0xff]  ;;  %v2014_v11 = vld [vmem:[%s2571_s1 + $0x100] sm:$0xff]  ;;  %v1516_v14 = vld [vmem:[%s2184_s30 + $0x24] sm:$0xf0] }
  0x22   : > { %1067 = vmatpush.bf16.msra.mxu3 %v2008_v17  ;;  %v1946_v12 = vld [vmem:[%s2184_s30 + $0x4] sm:$0xf]  ;;  %v2053_v13 = vld [vmem:[%s2571_s1 + $0x238] sm:$0xff]  ;;  %v1530_v15 = vld [vmem:[%s2184_s30 + $0x10] sm:$0xf] }
  0x23   : > { %v1952_v16 = vld [vmem:[%s2184_s30 + $0x30] sm:$0xf0]  ;;  %v1594_v17 = vld [vmem:[%s2184_s30 + $0x98] sm:$0xf]  ;;  %v1596_v24 = vld [vmem:[%s2184_s30 + $0xbc] sm:$0xf0] }
  0x24   : > { %2060 = vmatpush.bf16.msra.mxu1 %v1983_v18  ;;  %981 = vmatpush.bf16.msra.mxu0 %v1983_v18  ;;  %v1969_v18 = vld [vmem:[%s2184_s30 + $0xb8] sm:$0xf0]  ;;  %v1531_v21 = vor.u32 %v1952_v16, %v1530_v15  ;;  %v2052_v25 = vld [vmem:[%s2571_s1 + $0x230] sm:$0xff]  ;;  %v2027_v26 = vld [vmem:[%s2571_s1 + $0x168] sm:$0xff] }
  0x25   : > { %1039 = vmatpush.bf16.msra.mxu2 %v1999_v19  ;;  %v2028_v19 = vld [vmem:[%s2571_s1 + $0x170] sm:$0xff]  ;;  %v2051_v29 = vld [vmem:[%s2571_s1 + $0x228] sm:$0xff]  ;;  %v2049_v51 = vld [vmem:[%s2571_s1 + $0x218] sm:$0xff] }
  0x26   : > { %1068 = vmatpush.bf16.msra.mxu3 %v2007_v23  ;;  %v1965_v23 = vld [vmem:[%s2184_s30 + $0x9c] sm:$0xf]  ;;  %v1955_v36 = vld [vmem:[%s2184_s30 + $0x4c] sm:$0xf]  ;;  %v1552_v37 = vld [vmem:[%s2184_s30 + $0x6c] sm:$0xf0] }
  0x27   : > { %v1599_v28 = vor.u32 %v1965_v23, %v1596_v24  ;;  %v2022_v52 = vld [vmem:[%s2571_s1 + $0x140] sm:$0xff]  ;;  %v2048_v53 = vld [vmem:[%s2571_s1 + $0x210] sm:$0xff]  ;;  %v2047_v54 = vld [vmem:[%s2571_s1 + $0x208] sm:$0xff] }
  0x28   : > { %2061 = vmatpush.bf16.msra.mxu1 %v1982_v20  ;;  %982 = vmatpush.bf16.msra.mxu0 %v1982_v20  ;;  %v1519_v20 = vor.u32 %v1946_v12, %v1516_v14  ;;  %v1588_v56 = vld [vmem:[%s2184_s30 + $0xb4] sm:$0xf0]  ;;  %v1602_v57 = vld [vmem:[%s2184_s30 + $0xa0] sm:$0xf]  ;;  %v1576_v14 = vld [vmem:[%s2184_s30 + $0x84] sm:$0xf0] }
  0x29   : > { %1040 = vmatpush.bf16.msra.mxu2 %v1998_v27  ;;  %v2031_v27 = vld [vmem:[%s2571_s1 + $0x188] sm:$0xff]  ;;  %v1948_v16 = vld [vmem:[%s2184_s30 + $0x14] sm:$0xf] }
  0x2a   : > { %1069 = vmatpush.bf16.msra.mxu3 %v2006_v35  ;;  %v2025_v35 = vld [vmem:[%s2571_s1 + $0x158] sm:$0xff] }
  0x2b   : > { %993 = vmatmul.bf16.vlgmr.msra.gmra.mxu1 %v1587_v32  ;;  %983 = vmatmul.bf16.vlgmr.msra.gmra.mxu0 %v1515_v33  ;;  %v2026_v32 = vld [vmem:[%s2571_s1 + $0x160] sm:$0xff] }
  0x2c   : > { %1004 = vmatpush.bf16.msrb.mxu1 %v1997_v22  ;;  %1091 = vmatpush.bf16.msrb.mxu0 %v2021_v30  ;;  %v1595_v22 = vor.u32 %v1969_v18, %v1594_v17  ;;  %v2030_v30 = vld [vmem:[%s2571_s1 + $0x180] sm:$0xff]  ;;  %v1532_v17 = vld [vmem:[%s2184_s30 + $0x34] sm:$0xf0] }
  0x2d   : > { %1149 = vmatpush.bf16.msrb.mxu2 %v2037_v31  ;;  %1070 = vmatmul.bf16.vlgmr.msra.gmra.mxu3 %v1527_v42  ;;  %v2040_v31 = vld [vmem:[%s2571_s1 + $0x1d0] sm:$0xff]  ;;  %v2050_v33 = vld [vmem:[%s2571_s1 + $0x220] sm:$0xff] }
  0x2e   : > { %1041 = vmatmul.bf16.vlgmr.msra.gmra.mxu2 %v1523_v34  ;;  %1178 = vmatpush.bf16.msrb.mxu3 %v2045_v39  ;;  %v2039_v34 = vld [vmem:[%s2571_s1 + $0x1c8] sm:$0xff]  ;;  %v1961_v39 = vld [vmem:[%s2184_s30 + $0x78] sm:$0xf0]  ;;  %v2024_v42 = vld [vmem:[%s2571_s1 + $0x150] sm:$0xff] }
  0x2f   : > { %v1546_v18 = vld [vmem:[%s2184_s30 + $0x20] sm:$0xf] }
  0x30   : > { %1005 = vmatpush.bf16.msrb.mxu1 %v1996_v38  ;;  %1092 = vmatpush.bf16.msrb.mxu0 %v2020_v40  ;;  %v1566_v38 = vld [vmem:[%s2184_s30 + $0x58] sm:$0xf]  ;;  %v1630_v40 = vld [vmem:[%s2184_s30 + $0xe0] sm:$0xf] }
  0x31   : > { %1150 = vmatpush.bf16.msrb.mxu2 %v2036_v41  ;;  %v1978_v41 = vld [vmem:[%s2184_s30 + $0x100] sm:$0xf0] }
  0x32   : > { %1179 = vmatpush.bf16.msrb.mxu3 %v2044_v44  ;;  %v1567_v44 = vor.u32 %v1961_v39, %v1566_v38  ;;  %v1648_v38 = vld [vmem:[%s2184_s30 + $0x114] sm:$0xf0] }
  0x34   : > { %1006 = vmatpush.bf16.msrb.mxu1 %v1995_v43  ;;  %1093 = vmatpush.bf16.msrb.mxu0 %v2019_v45  ;;  %v1555_v43 = vor.u32 %v1955_v36, %v1552_v37  ;;  %v1631_v45 = vor.u32 %v1978_v41, %v1630_v40  ;;  %v1976_v37 = vld [vmem:[%s2184_s30 + $0xf4] sm:$0xf]  ;;  %v1966_v40 = vld [vmem:[%s2184_s30 + $0xa4] sm:$0xf]  ;;  %v1604_v41 = vld [vmem:[%s2184_s30 + $0xc4] sm:$0xf0] }
  0x35   : > { %1151 = vmatpush.bf16.msrb.mxu2 %v2035_v46  ;;  %v1974_v46 = vld [vmem:[%s2184_s30 + $0xe4] sm:$0xf]  ;;  %v1651_v39 = vor.u32 %v1976_v37, %v1648_v38 }
  0x36   : > { %1180 = vmatpush.bf16.msrb.mxu3 %v2043_v48 }
  0x38   : > { %1007 = vmatpush.bf16.msrb.mxu1 %v1994_v47  ;;  %1094 = vmatpush.bf16.msrb.mxu0 %v2018_v49  ;;  %v1632_v47 = vld [vmem:[%s2184_s30 + $0x104] sm:$0xf0] }
  0x39   : > { %1152 = vmatpush.bf16.msrb.mxu2 %v2034_v50  ;;  %v1635_v48 = vor.u32 %v1974_v46, %v1632_v47  ;;  %v2023_v49 = vld [vmem:[%s2571_s1 + $0x148] sm:$0xff]  ;;  %v2038_v50 = vld [vmem:[%s2571_s1 + $0x1c0] sm:$0xff]  ;;  %v1607_v46 = vor.u32 %v1966_v40, %v1604_v41 }
  0x3a   : > { %1181 = vmatpush.bf16.msrb.mxu3 %v2042_v5  ;;  %v1624_v5 = vld [vmem:[%s2184_s30 + $0xfc] sm:$0xf0] }
  0x3b   : > { %998 = vmatmul.bf16.gmra.mxu1 %v1623_v59  ;;  %988 = vmatmul.bf16.gmra.mxu0 %v1551_v60  ;;  %v1538_v59 = vld [vmem:[%s2184_s30 + $0x18] sm:$0xf]  ;;  %v1953_v60 = vld [vmem:[%s2184_s30 + $0x38] sm:$0xf0] }
  0x3c   : > { %1008 = vmatpush.bf16.msrb.mxu1 %v1993_v55  ;;  %1095 = vmatpush.bf16.msrb.mxu0 %v2017_v58  ;;  %v1964_v55 = vld [vmem:[%s2184_s30 + $0x94] sm:$0xf]  ;;  %v1970_v58 = vld [vmem:[%s2184_s30 + $0xc0] sm:$0xf0]  ;;  %v1539_v63 = vor.u32 %v1953_v60, %v1538_v59 }
  0x3d   : > { %1153 = vmatpush.bf16.msrb.mxu2 %v2033_v3  ;;  %1075 = vmatmul.bf16.gmra.mxu3 %v1563_v2  ;;  %v1603_v62 = vor.u32 %v1970_v58, %v1602_v57  ;;  %v2046_v3 = vld [vmem:[%s2571_s1 + $0x200] sm:$0xff] }
  0x3e   : > { %1046 = vmatmul.bf16.gmra.mxu2 %v1559_v61  ;;  %1182 = vmatpush.bf16.msrb.mxu3 %v2041_v8  ;;  %v1591_v61 = vor.u32 %v1964_v55, %v1588_v56  ;;  %v1574_v8 = vld [vmem:[%s2184_s30 + $0x60] sm:$0xf]  ;;  %v1975_v55 = vld [vmem:[%s2184_s30 + $0xec] sm:$0xf]  ;;  %v1640_v56 = vld [vmem:[%s2184_s30 + $0x10c] sm:$0xf0] }
  0x3f   : > { %v1643_v57 = vor.u32 %v1975_v55, %v1640_v56 }
  0x40   : > { %1009 = vmatpush.bf16.msrb.mxu1 %v1992_v0  ;;  %1096 = vmatpush.bf16.msrb.mxu0 %v2016_v1  ;;  %v1949_v0 = vld [vmem:[%s2184_s30 + $0x1c] sm:$0xf]  ;;  %v1540_v1 = vld [vmem:[%s2184_s30 + $0x3c] sm:$0xf0] }
  0x41   : > { %1154 = vmatpush.bf16.msrb.mxu2 %v2032_v7  ;;  %v1543_v2 = vor.u32 %v1949_v0, %v1540_v1  ;;  %v1979_v7 = vld [vmem:[%s2184_s30 + $0x108] sm:$0xf0] }
  0x42   : > { %1183 = vmatpush.bf16.msrb.mxu3 %v2040_v31  ;;  %v1963_v31 = vld [vmem:[%s2184_s30 + $0x88] sm:$0xf0] }
  0x44   : > { %1010 = vmatpush.bf16.msrb.mxu1 %v1991_v4  ;;  %1097 = vmatpush.bf16.msrb.mxu0 %v2015_v6  ;;  %v1973_v4 = vld [vmem:[%s2184_s30 + $0xdc] sm:$0xf]  ;;  %v1638_v6 = vld [vmem:[%s2184_s30 + $0xe8] sm:$0xf] }
  0x45   : > { %1155 = vmatpush.bf16.msrb.mxu2 %v2031_v27 }
  0x46   : > { %1184 = vmatpush.bf16.msrb.mxu3 %v2039_v34 }
  0x48   : > { %1011 = vmatpush.bf16.msrb.mxu1 %v1990_v9  ;;  %1098 = vmatpush.bf16.msrb.mxu0 %v2014_v11  ;;  %v1962_v9 = vld [vmem:[%s2184_s30 + $0x80] sm:$0xf0]  ;;  %v1639_v11 = vor.u32 %v1979_v7, %v1638_v6 }
  0x49   : > { %1156 = vmatpush.bf16.msrb.mxu2 %v2030_v30  ;;  %v1575_v12 = vor.u32 %v1962_v9, %v1574_v8  ;;  %v1582_v30 = vld [vmem:[%s2184_s30 + $0x68] sm:$0xf] }
  0x4a   : > { %1185 = vmatpush.bf16.msrb.mxu3 %v2038_v50 }
  0x4b   : > { %1012 = vmatmul.bf16.vlgmr.msrb.gmra.mxu1 %v1519_v20  ;;  %1099 = vmatmul.bf16.vlgmr.msrb.gmra.mxu0 %v1531_v21  ;;  %v1610_v20 = vld [vmem:[%s2184_s30 + $0xa8] sm:$0xf]  ;;  %v1971_v21 = vld [vmem:[%s2184_s30 + $0xc8] sm:$0xf0] }
  0x4c   : > { %1120 = vmatpush.bf16.msra.mxu1 %v2029_v10  ;;  %1207 = vmatpush.bf16.msra.mxu0 %v2053_v13  ;;  %v1627_v10 = vor.u32 %v1973_v4, %v1624_v5  ;;  %v1611_v24 = vor.u32 %v1971_v21, %v1610_v20 }
  0x4d   : > { %1080 = vmatmul.bf16.gmra.mxu3 %v1599_v28  ;;  %2062 = vmatpush.bf16.msra.mxu2 %v2053_v13  ;;  %v1958_v13 = vld [vmem:[%s2184_s30 + $0x64] sm:$0xf]  ;;  %v1957_v28 = vld [vmem:[%s2184_s30 + $0x5c] sm:$0xf] }
  0x4e   : > { %1051 = vmatmul.bf16.gmra.mxu2 %v1595_v22  ;;  %v1579_v15 = vor.u32 %v1958_v13, %v1576_v14  ;;  %v1535_v22 = vor.u32 %v1948_v16, %v1532_v17 }
  0x50   : > { %1121 = vmatpush.bf16.msra.mxu1 %v2028_v19  ;;  %1208 = vmatpush.bf16.msra.mxu0 %v2052_v25  ;;  %v1954_v19 = vld [vmem:[%s2184_s30 + $0x40] sm:$0xf0] }
  0x51   : > { %2063 = vmatpush.bf16.msra.mxu2 %v2052_v25  ;;  %v1547_v23 = vor.u32 %v1954_v19, %v1546_v18  ;;  %v1967_v25 = vld [vmem:[%s2184_s30 + $0xac] sm:$0xf] }
  0x54   : > { %1122 = vmatpush.bf16.msra.mxu1 %v2027_v26  ;;  %1209 = vmatpush.bf16.msra.mxu0 %v2051_v29  ;;  %v1612_v26 = vld [vmem:[%s2184_s30 + $0xcc] sm:$0xf0] }
  0x55   : > { %2064 = vmatpush.bf16.msra.mxu2 %v2051_v29  ;;  %v1615_v27 = vor.u32 %v1967_v25, %v1612_v26  ;;  %v1568_v29 = vld [vmem:[%s2184_s30 + $0x7c] sm:$0xf0] }
  0x56   : > { %v1571_v34 = vor.u32 %v1957_v28, %v1568_v29 }
  0x58   : > { %1123 = vmatpush.bf16.msra.mxu1 %v2026_v32  ;;  %1210 = vmatpush.bf16.msra.mxu0 %v2050_v33  ;;  %v1646_v32 = vld [vmem:[%s2184_s30 + $0xf0] sm:$0xf] }
  0x59   : > { %2065 = vmatpush.bf16.msra.mxu2 %v2050_v33  ;;  %v1980_v33 = vld [vmem:[%s2184_s30 + $0x110] sm:$0xf0] }
  0x5a   : > { %v1647_v36 = vor.u32 %v1980_v33, %v1646_v32 }
  0x5b   : > { %1017 = vmatmul.bf16.gmra.mxu1 %v1555_v43  ;;  %1104 = vmatmul.bf16.gmra.mxu0 %v1567_v44  ;;  %v1972_v43 = vld [vmem:[%s2184_s30 + $0xd0] sm:$0xf0]  ;;  %v1654_v44 = vld [vmem:[%s2184_s30 + $0xf8] sm:$0xf] }
  0x5c   : > { %1124 = vmatpush.bf16.msra.mxu1 %v2025_v35  ;;  %1211 = vmatpush.bf16.msra.mxu0 %v2049_v51  ;;  %v1583_v35 = vor.u32 %v1963_v31, %v1582_v30 }
  0x5d   : > { %1085 = vmatmul.bf16.gmra.mxu3 %v1635_v48  ;;  %2066 = vmatpush.bf16.msra.mxu2 %v2049_v51 }
  0x5e   : > { %1056 = vmatmul.bf16.gmra.mxu2 %v1631_v45  ;;  %v1981_v45 = vld [vmem:[%s2184_s30 + $0x118] sm:$0xf0] }
  0x5f   : > { %v1655_v50 = vor.u32 %v1981_v45, %v1654_v44 }
  0x60   : > { %1125 = vmatpush.bf16.msra.mxu1 %v2024_v42  ;;  %1212 = vmatpush.bf16.msra.mxu0 %v2048_v53  ;;  %v1618_v42 = vld [vmem:[%s2184_s30 + $0xb0] sm:$0xf]  ;;  %s2071_s30 = smul.u32 24, %s2575_s13 }
  0x61   : > { %2067 = vmatpush.bf16.msra.mxu2 %v2048_v53  ;;  %v1619_v47 = vor.u32 %v1972_v43, %v1618_v42 }
  0x62   : > { %s2534_s19 = scalar_lea.vmem %s2573_s3, %s2071_s30 }
  0x64   : > { %1126 = vmatpush.bf16.msra.mxu1 %v2023_v49  ;;  %1213 = vmatpush.bf16.msra.mxu0 %v2047_v54 }
  0x65   : > { %2068 = vmatpush.bf16.msra.mxu2 %v2047_v54 }
  0x68   : > { %1127 = vmatpush.bf16.msra.mxu1 %v2022_v52  ;;  %1214 = vmatpush.bf16.msra.mxu0 %v2046_v3 }
  0x69   : > { %2069 = vmatpush.bf16.msra.mxu2 %v2046_v3 }
  0x6b   : > { %1022 = vmatmul.bf16.gmra.mxu1 %v1591_v61  ;;  %1109 = vmatmul.bf16.gmra.mxu0 %v1603_v62 }
  0x6d   : > { %1186 = vmatmul.bf16.vlgmr.msrb.gmra.mxu3 %v1543_v2  ;;  %v2080_v2 = vld [vmem:[%s2572_s2] ss:$0 sm:$0xff] }
  0x6e   : > { %1157 = vmatmul.bf16.vlgmr.msrb.gmra.mxu2 %v1539_v63 }
  0x7b   : > { %1027 = vmatmul.bf16.gmra.mxu1 %v1627_v10  ;;  %1114 = vmatmul.bf16.gmra.mxu0 %v1639_v11 }
  0x7d   : > { %1191 = vmatmul.bf16.gmra.mxu3 %v1579_v15 }
  0x7e   : > { %1162 = vmatmul.bf16.gmra.mxu2 %v1575_v12 }
  0x8b   : > { %1128 = vmatmul.bf16.vlgmr.msra.gmra.mxu1 %v1535_v22  ;;  %1215 = vmatmul.bf16.vlgmr.msra.gmra.mxu0 %v1547_v23 }
  0x8d   : > { %1196 = vmatmul.bf16.gmra.mxu3 %v1615_v27 }
  0x8e   : > { %1167 = vmatmul.bf16.gmra.mxu2 %v1611_v24 }
  0x9b   : > { %1133 = vmatmul.bf16.gmra.mxu1 %v1571_v34  ;;  %1220 = vmatmul.bf16.gmra.mxu0 %v1583_v35 }
  0x9d   : > { %1201 = vmatmul.bf16.gmra.mxu3 %v1651_v39 }
  0x9e   : > { %1172 = vmatmul.bf16.gmra.mxu2 %v1647_v36 }
  0xa8   : > { %v994_v48 = vpop.f32.mrf.mxu1  ;;  %v984_v49 = vpop.f32.mrf.mxu0 }
  0xa9   : > { %v985_v3 = vadd.f32 %v2080_v2, %v984_v49  ;;  %v995_v37 = vadd.f32 %v2080_v2, %v994_v48 }
  0xab   : > { %1138 = vmatmul.bf16.gmra.mxu1 %v1607_v46  ;;  %1225 = vmatmul.bf16.gmra.mxu0 %v1619_v47 }
  0xae   : > { %1230 = vmatmul.bf16.vlgmr.msra.gmra.mxu2 %v1655_v50 }
  0xb0   : > { %v996_v52 = vpop.f32.mrf.mxu1  ;;  %v986_v53 = vpop.f32.mrf.mxu0 }
  0xb1   : > { %v1042_v51 = vpop.f32.mrf.mxu2  ;;  %v1071_v54 = vpop.f32.mrf.mxu3  ;;  %v987_v11 = vadd.f32 %v2080_v2, %v986_v53  ;;  %v997_v46 = vadd.f32 %v2080_v2, %v996_v52 }
  0xb8   : > { %v999_v59 = vpop.f32.mrf.mxu1  ;;  %v989_v60 = vpop.f32.mrf.mxu0 }
  0xb9   : > { %v1044_v58 = vpop.f32.mrf.mxu2  ;;  %v1073_v61 = vpop.f32.mrf.mxu3  ;;  %v990_v19 = vadd.f32 %v2080_v2, %v989_v60  ;;  %v1000_v55 = vadd.f32 %v2080_v2, %v999_v59 }
  0xbb   : > { %1143 = vmatmul.bf16.gmra.mxu1 %v1643_v57 }
  0xc0   : > { %v1001_v63 = vpop.f32.mrf.mxu1  ;;  %v991_v0 = vpop.f32.mrf.mxu0 }
  0xc1   : > { %v1047_v62 = vpop.f32.mrf.mxu2  ;;  %v1076_v1 = vpop.f32.mrf.mxu3  ;;  %v992_v28 = vadd.f32 %v2080_v2, %v991_v0  ;;  %v1002_v0 = vadd.f32 %v2080_v2, %v1001_v63 }
  0xc8   : > { %v1013_v5 = vpop.f32.mrf.mxu1  ;;  %v1100_v6 = vpop.f32.mrf.mxu0 }
  0xc9   : > { %v1049_v4 = vpop.f32.mrf.mxu2  ;;  %v1014_v7 = vadd.f32 %v1013_v5, %v985_v3  ;;  %v1078_v10 = vpop.f32.mrf.mxu3 }
  0xcb   : > { %v1043_v8 = vadd.f32 %v1042_v51, %v1014_v7 }
  0xcd   : > { %v1072_v9 = vadd.f32 %v1071_v54, %v1043_v8 }
  0xcf   : > { %v1101_v12 = vadd.f32 %v1100_v6, %v1072_v9 }
  0xd0   : > { %v1015_v14 = vpop.f32.mrf.mxu1  ;;  %v1102_v15 = vpop.f32.mrf.mxu0 }
  0xd1   : > { %v1052_v13 = vpop.f32.mrf.mxu2  ;;  %v1016_v16 = vadd.f32 %v1015_v14, %v987_v11  ;;  %v1081_v22 = vpop.f32.mrf.mxu3 }
  0xd3   : > { %v1045_v17 = vadd.f32 %v1044_v58, %v1016_v16 }
  0xd5   : > { %v1074_v18 = vadd.f32 %v1073_v61, %v1045_v17 }
  0xd7   : > { %v1103_v20 = vadd.f32 %v1102_v15, %v1074_v18 }
  0xd8   : > { %v1018_v23 = vpop.f32.mrf.mxu1  ;;  %v1105_v24 = vpop.f32.mrf.mxu0 }
  0xd9   : > { %v1054_v21 = vpop.f32.mrf.mxu2  ;;  %v1019_v25 = vadd.f32 %v1018_v23, %v990_v19  ;;  %v2420_v34 = vpop.f32.mrf.mxu3 }
  0xdb   : > { %v1048_v26 = vadd.f32 %v1047_v62, %v1019_v25 }
  0xdd   : > { %v1077_v27 = vadd.f32 %v1076_v1, %v1048_v26 }
  0xdf   : > { %v1106_v29 = vadd.f32 %v1105_v24, %v1077_v27 }
  0xe0   : > { %v1020_v31 = vpop.f32.mrf.mxu1  ;;  %v1107_v32 = vpop.f32.mrf.mxu0 }
  0xe1   : > { %v1057_v30 = vpop.f32.mrf.mxu2  ;;  %v1021_v33 = vadd.f32 %v1020_v31, %v992_v28  ;;  %v1086_v44 = vpop.f32.mrf.mxu3 }
  0xe3   : > { %v1050_v35 = vadd.f32 %v1049_v4, %v1021_v33 }
  0xe5   : > { %v1079_v36 = vadd.f32 %v1078_v10, %v1050_v35 }
  0xe7   : > { %v2422_v38 = vadd.f32 %v1107_v32, %v1079_v36 }
  0xe8   : > { %v1023_v40 = vpop.f32.mrf.mxu1  ;;  %v1110_v41 = vpop.f32.mrf.mxu0 }
  0xe9   : > { %v1059_v39 = vpop.f32.mrf.mxu2  ;;  %v1024_v42 = vadd.f32 %v1023_v40, %v995_v37  ;;  %v2430_v48 = vpop.f32.mrf.mxu3 }
  0xeb   : > { %v1053_v43 = vadd.f32 %v1052_v13, %v1024_v42 }
  0xed   : > { %v1082_v45 = vadd.f32 %v1081_v22, %v1053_v43 }
  0xef   : > { %v2424_v47 = vadd.f32 %v1110_v41, %v1082_v45 }
  0xf0   : > { %v1025_v50 = vpop.f32.mrf.mxu1  ;;  %v2426_v51 = vpop.f32.mrf.mxu0 }
  0xf1   : > { %v1158_v49 = vpop.f32.mrf.mxu2  ;;  %v1026_v53 = vadd.f32 %v1025_v50, %v997_v46  ;;  %v1187_v1 = vpop.f32.mrf.mxu3 }
  0xf3   : > { %v2428_v54 = vadd.f32 %v1054_v21, %v1026_v53 }
  0xf8   : > { %v1028_v57 = vpop.f32.mrf.mxu1  ;;  %v1115_v58 = vpop.f32.mrf.mxu0 }
  0xf9   : > { %v1160_v56 = vpop.f32.mrf.mxu2  ;;  %v1029_v60 = vadd.f32 %v1028_v57, %v1000_v55  ;;  %v1189_v10 = vpop.f32.mrf.mxu3 }
  0xfb   : > { %v1058_v61 = vadd.f32 %v1057_v30, %v1029_v60 }
  0xfd   : > { %v1087_v62 = vadd.f32 %v1086_v44, %v1058_v61 }
  0xff   : > { %v2432_v52 = vadd.f32 %v1115_v58, %v1087_v62 }
 0x100   : > { %v1030_v3 = vpop.f32.mrf.mxu1  ;;  %v2434_v4 = vpop.f32.mrf.mxu0 }
 0x101   : > { %v1031_v5 = vadd.f32 %v1030_v3, %v1002_v0  ;;  %v1163_v6 = vpop.f32.mrf.mxu2  ;;  %v1192_v17 = vpop.f32.mrf.mxu3 }
 0x103   : > { %v2436_v7 = vadd.f32 %v1059_v39, %v1031_v5 }
 0x108   : > { %v1129_v8 = vpop.f32.mrf.mxu1  ;;  %v1216_v9 = vpop.f32.mrf.mxu0 }
 0x109   : > { %v1130_v59 = vadd.f32 %v1129_v8, %v1101_v12  ;;  %v1165_v13 = vpop.f32.mrf.mxu2  ;;  %v1194_v41 = vpop.f32.mrf.mxu3 }
 0x10b   : > { %v1159_v11 = vadd.f32 %v1158_v49, %v1130_v59 }
 0x10d   : > { %v1188_v14 = vadd.f32 %v1187_v1, %v1159_v11 }
 0x10f   : > { %v1217_v2 = vadd.f32 %v1216_v9, %v1188_v14 }
 0x110   : > { %v1131_v15 = vpop.f32.mrf.mxu1  ;;  %v1218_v16 = vpop.f32.mrf.mxu0 }
 0x111   : > { %v1132_v63 = vadd.f32 %v1131_v15, %v1103_v20  ;;  %v1236_v19 = vmax.f32 %v1217_v2, 0.0  ;;  %v2438_v21 = vpop.f32.mrf.mxu2 }
 0x113   : > { %v1161_v18 = vadd.f32 %v1160_v56, %v1132_v63  ;;  %v1245_v26 = vsel %vm1244_vm0, %v1236_v19, -inf  ;;  %v1256_v20 = vsel %vm1255_vm1, %v1236_v19, -inf  ;;  %v1267_v28 = vsel %vm1266_vm2, %v1236_v19, -inf  ;;  %v1197_v63 = vpop.f32.mrf.mxu3 }
 0x114   : > { %v1278_v30 = vsel %vm1277_vm3, %v1236_v19, -inf }
 0x115   : > { %v1190_v22 = vadd.f32 %v1189_v10, %v1161_v18 }
 0x117   : > { %v1219_v23 = vadd.f32 %v1218_v16, %v1190_v22 }
 0x118   : > { %v1134_v12 = vpop.f32.mrf.mxu1  ;;  %v1221_v25 = vpop.f32.mrf.mxu0 }
 0x119   : > { %v1135_v24 = vadd.f32 %v1134_v12, %v1106_v29  ;;  %v1237_v27 = vmax.f32 %v1219_v23, 0.0  ;;  %v2452_v56 = vpop.f32.mrf.mxu2 }
 0x11b   : > { %v1164_v31 = vadd.f32 %v1163_v6, %v1135_v24  ;;  %v1246_v32 = vsel %vm1244_vm0, %v1237_v27, -inf  ;;  %v1257_v33 = vsel %vm1255_vm1, %v1237_v27, -inf  ;;  %v1268_v35 = vsel %vm1266_vm2, %v1237_v27, -inf }
 0x11c   : > { %v1279_v36 = vsel %vm1277_vm3, %v1237_v27, -inf  ;;  %v1247_v29 = vmax.f32 %v1245_v26, %v1246_v32  ;;  %v1258_v37 = vmax.f32 %v1256_v20, %v1257_v33  ;;  %v1269_v39 = vmax.f32 %v1267_v28, %v1268_v35 }
 0x11d   : > { %v1280_v40 = vmax.f32 %v1278_v30, %v1279_v36  ;;  %v1193_v42 = vadd.f32 %v1192_v17, %v1164_v31 }
 0x11e   : > { %v1248_v43 = vsel %vm1244_vm0, %v1247_v29, -inf  ;;  %v1259_v44 = vsel %vm1255_vm1, %v1258_v37, -inf  ;;  %v1270_v45 = vsel %vm1266_vm2, %v1269_v39, -inf }
 0x11f   : > { %v1281_v46 = vsel %vm1277_vm3, %v1280_v40, -inf  ;;  %v1249_v49 = vrot.slane %v1248_v43, 4  ;;  %v1260_v50 = vrot.slane %v1259_v44, 4  ;;  %v1271_v53 = vrot.slane %v1270_v45, 4 }
 0x120   : > { %v1282_v55 = vrot.slane %v1281_v46, 4  ;;  %v1136_v57 = vpop.f32.mrf.mxu1  ;;  %v1222_v1 = vadd.f32 %v1221_v25, %v1193_v42  ;;  %v1223_v5 = vpop.f32.mrf.mxu0 }
 0x121   : > { %v1137_v58 = vadd.f32 %v1136_v57, %v2422_v38  ;;  %v1250_v60 = vmax.f32 %v1248_v43, %v1249_v49  ;;  %v1261_v61 = vmax.f32 %v1259_v44, %v1260_v50  ;;  %v1272_v62 = vmax.f32 %v1270_v45, %v1271_v53  ;;  %v2466_v20 = vpop.f32.mrf.mxu2 }
 0x122   : > { %v1283_v0 = vmax.f32 %v1281_v46, %v1282_v55  ;;  %v1238_v16 = vmax.f32 %v1222_v1, 0.0 }
 0x123   : > { %v1166_v3 = vadd.f32 %v1165_v13, %v1137_v58  ;;  %v1251_v6 = vrot.slane %v1250_v60, 2  ;;  %v1262_v8 = vrot.slane %v1261_v61, 2  ;;  %v1273_v9 = vrot.slane %v1272_v62, 2 }
 0x124   : > { %v1284_v59 = vrot.slane %v1283_v0, 2  ;;  %v1084_v13 = vadd.f32 %v2420_v34, %v2428_v54  ;;  %v1288_v28 = vsel %vm1244_vm0, %v1238_v16, -inf  ;;  %v1298_v30 = vsel %vm1255_vm1, %v1238_v16, -inf }
 0x125   : > { %v1252_v10 = vmax.f32 %v1250_v60, %v1251_v6  ;;  %v1263_v11 = vmax.f32 %v1261_v61, %v1262_v8  ;;  %v1274_v14 = vmax.f32 %v1272_v62, %v1273_v9  ;;  %v1195_v2 = vadd.f32 %v1194_v41, %v1166_v3  ;;  %v1199_v61 = vpop.f32.mrf.mxu3 }
 0x126   : > { %v1285_v15 = vmax.f32 %v1283_v0, %v1284_v59  ;;  %v1308_v32 = vsel %vm1266_vm2, %v1238_v16, -inf  ;;  %v1318_v33 = vsel %vm1277_vm3, %v1238_v16, -inf  ;;  %v1113_v43 = vadd.f32 %v2426_v51, %v1084_v13 }
 0x127   : > { %v1253_v17 = vrot.slane %v1252_v10, 1  ;;  %v1264_v38 = vrot.slane %v1263_v11, 1  ;;  %v1275_v18 = vrot.slane %v1274_v14, 1  ;;  %v1224_v23 = vadd.f32 %v1223_v5, %v1195_v2 }
 0x128   : > { %v1286_v19 = vrot.slane %v1285_v15, 1  ;;  %v1139_v22 = vpop.f32.mrf.mxu1  ;;  %v1226_v39 = vpop.f32.mrf.mxu0  ;;  %v1089_v6 = vadd.f32 %v2430_v48, %v2436_v7 }
 0x129   : > { %v1140_v12 = vadd.f32 %v1139_v22, %v2424_v47  ;;  %v2458_v24 = vmax.f32 %v1252_v10, %v1253_v17  ;;  %v2460_v25 = vmax.f32 %v1263_v11, %v1264_v38  ;;  %v2462_v26 = vmax.f32 %v1274_v14, %v1275_v18  ;;  %v2488_v8 = vpop.f32.mrf.mxu2 }
 0x12a   : > { %v2464_v27 = vmax.f32 %v1285_v15, %v1286_v19  ;;  %v1239_v31 = vmax.f32 %v1224_v23, 0.0  ;;  %v1118_v18 = vadd.f32 %v2434_v4, %v1089_v6 }
 0x12b   : > { %v1169_v34 = vadd.f32 %v2438_v21, %v1140_v12  ;;  %v1408_v47 = vmax.f32 %v2458_v24, %v2460_v25 }
 0x12c   : > { %v1411_v54 = vmax.f32 %v2462_v26, %v2464_v27  ;;  %v1289_v35 = vsel %vm1244_vm0, %v1239_v31, -inf  ;;  %v1299_v36 = vsel %vm1255_vm1, %v1239_v31, -inf  ;;  %v1309_v29 = vsel %vm1266_vm2, %v1239_v31, -inf }
 0x12d   : > { %v1319_v37 = vsel %vm1277_vm3, %v1239_v31, -inf  ;;  %v1290_v21 = vmax.f32 %v1288_v28, %v1289_v35  ;;  %v1300_v40 = vmax.f32 %v1298_v30, %v1299_v36  ;;  %v1310_v41 = vmax.f32 %v1308_v32, %v1309_v29  ;;  %v1202_v4 = vpop.f32.mrf.mxu3 }
 0x12e   : > { %v1320_v42 = vmax.f32 %v1318_v33, %v1319_v37  ;;  %v1198_v44 = vadd.f32 %v1197_v63, %v1169_v34 }
 0x12f   : > { %v1291_v45 = vsel %vm1244_vm0, %v1290_v21, -inf  ;;  %v1301_v46 = vsel %vm1255_vm1, %v1300_v40, -inf  ;;  %v1311_v49 = vsel %vm1266_vm2, %v1310_v41, -inf }
 0x130   : > { %v1321_v50 = vsel %vm1277_vm3, %v1320_v42, -inf  ;;  %v1141_v53 = vpop.f32.mrf.mxu1  ;;  %v1292_v55 = vrot.slane %v1291_v45, 4  ;;  %v1302_v57 = vrot.slane %v1301_v46, 4  ;;  %v1312_v58 = vrot.slane %v1311_v49, 4  ;;  %v1228_v38 = vpop.f32.mrf.mxu0 }
 0x131   : > { %v1322_v60 = vrot.slane %v1321_v50, 4  ;;  %v1227_v62 = vadd.f32 %v1226_v39, %v1198_v44  ;;  %v1142_v0 = vadd.f32 %v1141_v53, %v1113_v43  ;;  %v1231_v44 = vpop.f32.mrf.mxu2 }
 0x132   : > { %v1293_v1 = vmax.f32 %v1291_v45, %v1292_v55  ;;  %v1303_v3 = vmax.f32 %v1301_v46, %v1302_v57  ;;  %v1313_v51 = vmax.f32 %v1311_v49, %v1312_v58 }
 0x133   : > { %v1323_v5 = vmax.f32 %v1321_v50, %v1322_v60  ;;  %v1171_v9 = vadd.f32 %v2452_v56, %v1142_v0  ;;  %v1240_v15 = vmax.f32 %v1227_v62, 0.0 }
 0x134   : > { %v1294_v59 = vrot.slane %v1293_v1, 2  ;;  %v1304_v10 = vrot.slane %v1303_v3, 2  ;;  %v1314_v11 = vrot.slane %v1313_v51, 2 }
 0x135   : > { %v1324_v14 = vrot.slane %v1323_v5, 2  ;;  %v1200_v19 = vadd.f32 %v1199_v61, %v1171_v9  ;;  %v1328_v23 = vsel %vm1244_vm0, %v1240_v15, -inf  ;;  %v1338_v32 = vsel %vm1255_vm1, %v1240_v15, -inf }
 0x136   : > { %v1295_v16 = vmax.f32 %v1293_v1, %v1294_v59  ;;  %v1305_v63 = vmax.f32 %v1303_v3, %v1304_v10  ;;  %v1315_v2 = vmax.f32 %v1313_v51, %v1314_v11  ;;  %v1348_v35 = vsel %vm1266_vm2, %v1240_v15, -inf }
 0x137   : > { %v1325_v17 = vmax.f32 %v1323_v5, %v1324_v14  ;;  %v1229_v12 = vadd.f32 %v1228_v38, %v1200_v19  ;;  %v1358_v36 = vsel %vm1277_vm3, %v1240_v15, -inf  ;;  %v1204_v15 = vpop.f32.mrf.mxu3 }
 0x138   : > { %v1144_v48 = vpop.f32.mrf.mxu1  ;;  %v1296_v7 = vrot.slane %v1295_v16, 1  ;;  %v1306_v22 = vrot.slane %v1305_v63, 1  ;;  %v1316_v13 = vrot.slane %v1315_v2, 1 }
 0x139   : > { %v1326_v56 = vrot.slane %v1325_v17, 1  ;;  %v1145_v28 = vadd.f32 %v1144_v48, %v2432_v52  ;;  %v1241_v29 = vmax.f32 %v1229_v12, 0.0 }
 0x13a   : > { %v1297_v30 = vmax.f32 %v1295_v16, %v1296_v7  ;;  %v1307_v31 = vmax.f32 %v1305_v63, %v1306_v22  ;;  %v1317_v34 = vmax.f32 %v1315_v2, %v1316_v13  ;;  %v1233_v7 = vpop.f32.mrf.mxu2 }
 0x13b   : > { %v1327_v33 = vmax.f32 %v1325_v17, %v1326_v56  ;;  %v1174_v21 = vadd.f32 %v2466_v20, %v1145_v28  ;;  %v1329_v41 = vsel %vm1244_vm0, %v1241_v29, -inf  ;;  %v1339_v42 = vsel %vm1255_vm1, %v1241_v29, -inf }
 0x13c   : > { %v1409_v37 = vmax.f32 %v1408_v47, %v1297_v30  ;;  %v1412_v52 = vmax.f32 %v1411_v54, %v1317_v34  ;;  %v1436_v39 = vsel %vm1423_vm4, %v2464_v27, %v1297_v30  ;;  %v1349_v43 = vsel %vm1266_vm2, %v1241_v29, -inf }
 0x13d   : > { %v1437_v40 = vsel %vm1244_vm0, %v1436_v39, %v1307_v31  ;;  %v1330_v46 = vmax.f32 %v1328_v23, %v1329_v41  ;;  %v1340_v49 = vmax.f32 %v1338_v32, %v1339_v42  ;;  %v1350_v20 = vmax.f32 %v1348_v35, %v1349_v43 }
 0x13e   : > { %v2510_v45 = vmax.f32 %v1409_v37, %v1307_v31  ;;  %v2512_v47 = vmax.f32 %v1412_v52, %v1327_v33  ;;  %v1438_v54 = vsel %vm1426_vm5, %v1437_v40, %v1317_v34  ;;  %v1359_v50 = vsel %vm1277_vm3, %v1241_v29, -inf }
 0x13f   : > { %v1439_v27 = vsel %vm1428_vm6, %v1438_v54, %v1327_v33  ;;  %v1331_v57 = vsel %vm1244_vm0, %v1330_v46, -inf  ;;  %v1360_v58 = vmax.f32 %v1358_v36, %v1359_v50  ;;  %v1203_v60 = vadd.f32 %v1202_v4, %v1174_v21 }
 0x140   : > { %v1146_v53 = vpop.f32.mrf.mxu1  ;;  %v1420_v55 = vmax.f32 %v2510_v45, %v2512_v47  ;;  %v1332_v61 = vrot.slane %v1331_v57, 4  ;;  %v1341_v62 = vsel %vm1255_vm1, %v1340_v49, -inf  ;;  %v1351_v0 = vsel %vm1266_vm2, %v1350_v20, -inf }
 0x141   : > { %v1147_v1 = vadd.f32 %v1146_v53, %v1118_v18  ;;  %v1342_v3 = vrot.slane %v1341_v62, 4  ;;  %v1352_v51 = vrot.slane %v1351_v0, 4  ;;  %v1361_v5 = vsel %vm1277_vm3, %v1360_v58, -inf }
 0x142   : > { %v1232_v6 = vadd.f32 %v1231_v44, %v1203_v60  ;;  %v1333_v9 = vmax.f32 %v1331_v57, %v1332_v61  ;;  %v1362_v59 = vrot.slane %v1361_v5, 4 }
 0x143   : > { %v1176_v10 = vadd.f32 %v2488_v8, %v1147_v1  ;;  %v1343_v11 = vmax.f32 %v1341_v62, %v1342_v3  ;;  %v1353_v14 = vmax.f32 %v1351_v0, %v1352_v51 }
 0x144   : > { %v1334_v16 = vrot.slane %v1333_v9, 2  ;;  %v1363_v63 = vmax.f32 %v1361_v5, %v1362_v59  ;;  %v1242_v2 = vmax.f32 %v1232_v6, 0.0 }
 0x145   : > { %v1205_v17 = vadd.f32 %v1204_v15, %v1176_v10  ;;  %v1344_v38 = vrot.slane %v1343_v11, 2  ;;  %v1354_v19 = vrot.slane %v1353_v14, 2 }
 0x146   : > { %v1335_v18 = vmax.f32 %v1333_v9, %v1334_v16  ;;  %v1364_v48 = vrot.slane %v1363_v63, 2  ;;  %v1368_v12 = vsel %vm1244_vm0, %v1242_v2, -inf  ;;  %v1378_v31 = vsel %vm1255_vm1, %v1242_v2, -inf }
 0x147   : > { %v1345_v22 = vmax.f32 %v1343_v11, %v1344_v38  ;;  %v1355_v13 = vmax.f32 %v1353_v14, %v1354_v19  ;;  %v1234_v56 = vadd.f32 %v1233_v7, %v1205_v17  ;;  %v1388_v33 = vsel %vm1266_vm2, %v1242_v2, -inf }
 0x148   : > { %v1336_v8 = vrot.slane %v1335_v18, 1  ;;  %v1365_v23 = vmax.f32 %v1363_v63, %v1364_v48  ;;  %v1398_v35 = vsel %vm1277_vm3, %v1242_v2, -inf }
 0x149   : > { %v1346_v28 = vrot.slane %v1345_v22, 1  ;;  %v1356_v30 = vrot.slane %v1355_v13, 1  ;;  %v1243_v34 = vmax.f32 %v1234_v56, 0.0 }
 0x14a   : > { %v1337_v32 = vmax.f32 %v1335_v18, %v1336_v8  ;;  %v1366_v4 = vrot.slane %v1365_v23, 1 }
 0x14b   : > { %v1347_v36 = vmax.f32 %v1345_v22, %v1346_v28  ;;  %v1357_v29 = vmax.f32 %v1355_v13, %v1356_v30  ;;  %v1369_v37 = vsel %vm1244_vm0, %v1243_v34, -inf  ;;  %v1379_v52 = vsel %vm1255_vm1, %v1243_v34, -inf }
 0x14c   : > { %v1367_v39 = vmax.f32 %v1365_v23, %v1366_v4  ;;  %v1440_v21 = vsel %vm1430_vm7, %v1439_v27, %v1337_v32  ;;  %v1370_v40 = vmax.f32 %v1368_v12, %v1369_v37  ;;  %v1380_v41 = vmax.f32 %v1378_v31, %v1379_v52 }
 0x14d   : > { %v1414_v42 = vmax.f32 %v1337_v32, %v1347_v36  ;;  %v1441_v43 = vsel %vm1432_vm8, %v1440_v21, %v1347_v36  ;;  %v1389_v44 = vsel %vm1266_vm2, %v1243_v34, -inf  ;;  %v1399_v54 = vsel %vm1277_vm3, %v1243_v34, -inf }
 0x14e   : > { %v1417_v46 = vmax.f32 %v1357_v29, %v1367_v39  ;;  %v1442_v49 = vsel %vm1434_vm9, %v1441_v43, %v1357_v29  ;;  %v1371_v20 = vsel %vm1244_vm0, %v1370_v40, -inf  ;;  %v1381_v50 = vsel %vm1255_vm1, %v1380_v41, -inf }
 0x14f   : > { %1448 = vst [vmem:[%s2534_s19 + $0x8] sm:$0xff] %v1442_v49  ;;  %v1372_v53 = vrot.slane %v1371_v20, 4  ;;  %v1382_v57 = vrot.slane %v1381_v50, 4  ;;  %v1390_v27 = vmax.f32 %v1388_v33, %v1389_v44  ;;  %v1400_v58 = vmax.f32 %v1398_v35, %v1399_v54 }
 0x151   : > { %v1373_v60 = vmax.f32 %v1371_v20, %v1372_v53  ;;  %v1383_v61 = vmax.f32 %v1381_v50, %v1382_v57  ;;  %v1391_v62 = vsel %vm1266_vm2, %v1390_v27, -inf  ;;  %v1401_v0 = vsel %vm1277_vm3, %v1400_v58, -inf }
 0x152   : > { %v1392_v1 = vrot.slane %v1391_v62, 4  ;;  %v1402_v3 = vrot.slane %v1401_v0, 4 }
 0x153   : > { %v1374_v51 = vrot.slane %v1373_v60, 2  ;;  %v1384_v5 = vrot.slane %v1383_v61, 2 }
 0x154   : > { %v1393_v6 = vmax.f32 %v1391_v62, %v1392_v1  ;;  %v1403_v9 = vmax.f32 %v1401_v0, %v1402_v3 }
 0x155   : > { %v1375_v59 = vmax.f32 %v1373_v60, %v1374_v51  ;;  %v1385_v10 = vmax.f32 %v1383_v61, %v1384_v5 }
 0x156   : > { %v1394_v11 = vrot.slane %v1393_v6, 2  ;;  %v1404_v14 = vrot.slane %v1403_v9, 2 }
 0x157   : > { %v1376_v15 = vrot.slane %v1375_v59, 1  ;;  %v1386_v16 = vrot.slane %v1385_v10, 1 }
 0x158   : > { %v1395_v63 = vmax.f32 %v1393_v6, %v1394_v11  ;;  %v1405_v2 = vmax.f32 %v1403_v9, %v1404_v14 }
 0x159   : > { %v1377_v17 = vmax.f32 %v1375_v59, %v1376_v15  ;;  %v1387_v38 = vmax.f32 %v1385_v10, %v1386_v16 }
 0x15a   : > { %v1396_v19 = vrot.slane %v1395_v63, 1  ;;  %v1406_v18 = vrot.slane %v1405_v2, 1 }
 0x15b   : > { %v1415_v48 = vmax.f32 %v1414_v42, %v1377_v17  ;;  %v1443_v7 = vsel %vm1423_vm4, %v1367_v39, %v1377_v17 }
 0x15c   : > { %v1397_v22 = vmax.f32 %v1395_v63, %v1396_v19  ;;  %v1444_v13 = vsel %vm1244_vm0, %v1443_v7, %v1387_v38  ;;  %v1407_v56 = vmax.f32 %v1405_v2, %v1406_v18 }
 0x15d   : > { %v1416_v8 = vmax.f32 %v1415_v48, %v1387_v38 }
 0x15e   : > { %v1418_v23 = vmax.f32 %v1417_v46, %v1397_v22  ;;  %v1445_v12 = vsel %vm1426_vm5, %v1444_v13, %v1397_v22 }
 0x15f   : > { %v1421_v28 = vmax.f32 %v1420_v55, %v1416_v8  ;;  %v1446_v30 = vsel %vm1428_vm6, %v1445_v12, %v1407_v56 }
 0x160   : > { %v1419_v31 = vmax.f32 %v1418_v23, %v1407_v56  ;;  %1449 = vst [vmem:[%s2534_s19 + $0x10] sm:$0x1f] %v1446_v30 }
 0x162   : > { %v1422_v34 = vmax.f32 %v1421_v28, %v1419_v31 }
 0x164   : > { %v1424_v32 = vsel %vm1423_vm4, %v1422_v34, %v2510_v45 }
 0x165   : > { %v1425_v4 = vsel %vm1244_vm0, %v1424_v32, %v2512_v47 }
 0x166   : > { %v1427_v33 = vsel %vm1426_vm5, %v1425_v4, %v1416_v8 }
 0x167   : > { %v1429_v35 = vsel %vm1428_vm6, %v1427_v33, %v1419_v31 }
 0x168   : > { %v1431_v36 = vsel %vm1430_vm7, %v1429_v35, %v2458_v24 }
 0x169   : > { %v1433_v55 = vsel %vm1432_vm8, %v1431_v36, %v2460_v25 }
 0x16a   : > { %v1435_v29 = vsel %vm1434_vm9, %v1433_v55, %v2462_v26 }
 0x16b   : > { %1447 = vst [vmem:[%s2534_s19] sm:$0xff] %v1435_v29 }
 0x16c PF: > { %s13_s12 = sadd.s32 1, %s2087_s12  }
 0x16d   : > { %p10_p4 = scmp.ge.s32.totalorder %s13_s12, 4  }
 0x16f   :  { %12 = sbr.rel (!%p10_p4) target bundleno = 1 (0x1), region = 62 }

</bundles_post_ra>
